<compile_context>
chip_gen: v6e
topology: v6e:2x2x1
jax: 0.10.0
libtpu: 0.0.40
codegen_flags: <defaults>
</compile_context>

<pallas_src>
import numpy as np
import jax
import jax.numpy as jnp
from jax.experimental import pallas as pl
from jax.experimental.pallas import tpu as pltpu

# ----------------------------- configuration --------------------------------
BATCH = 2
INPUT_SIZE = 4
OUTPUT_SIZE = 4                 # == INPUT_SIZE so RevIN denorm applies
CL = 4                          # train_coupled_len
PRED_LEN = 4
ERT = 12                        # embedding_rec_times
REC_TIMES = 96                  # recurrent_times
ES = REC_TIMES // ERT           # embedding_size = 8
EMBED_Y2X = ERT - PRED_LEN      # 8
ENC_OUT = 22                    # encoder hidden (mlp) size
KS = 3
DILATIONS = (1, 2)
C1 = 4                          # one_neuron channels = [4, 1]
RF = 1 + (KS - 1) * DILATIONS[0] + (KS - 1) * DILATIONS[1]   # 7
L0 = ENC_OUT                    # 22
L1 = L0 - (KS - 1) * DILATIONS[0]          # 20
L2 = L1 - (KS - 1) * DILATIONS[1]          # 16 == each_rec_out_size
REC_ITER = REC_TIMES // L2                 # 6
TOTAL_T = CL + ERT - 1                     # 15 (diagonal time axis)
NUM_WIN = TOTAL_T - EMBED_Y2X + 1          # 8 == CL + PRED_LEN
N_ROWS = BATCH * CL                        # 8
HEAD_IN = EMBED_Y2X * ES                   # 64
WV = NUM_WIN * OUTPUT_SIZE                 # 32 (head lanes per t-block)
EPS = 1e-5
LANES = 128

assert REC_TIMES % ERT == 0 and REC_TIMES % L2 == 0
assert L2 == ENC_OUT - RF + 1
assert CL * WV == LANES                    # G packs exactly into 128 lanes

# -------- packed parameter-slab row offsets (8-aligned per matrix) -----------
R_VEC = 0      # row 0: rev_w[0:4] rev_b[4:8] enc_b[8:30] b2[32:48] bias_t[64:96]
R_B1 = 1       # row 1: b1[0:80]
R_AVG = 8      # [8, 8]   per-batch averaging matrix ((t,b) row order)
R_ENCW = 16    # [4, 22]
R_T1 = 24      # [22, 80] conv1 Toeplitz
R_T2 = 48      # [80, 16] conv2 Toeplitz
R_MJ = 128     # [30, 96] diagonal-mean mask (count-prescaled)
R_G = 160      # [96, 128] fused diag-mean+unfold+head matrices, G[t] at lanes t*32
SLAB_ROWS = 256

# packed output-slab layout
OUT_ROWS = 40  # rec at [0:8, 0:96]; head at [0:2, 96:128]; meany at [8:38, 0:8]

_VMEM = lambda: pl.BlockSpec(memory_space=pltpu.MemorySpace.VMEM)


# --------------------- host-side (one-time) constant builders ----------------
def _build_counts():
    c = np.zeros((TOTAL_T,), np.float32)
    for t in range(CL):
        for j in range(ERT):
            c[t + j] += 1.0
    return c


def _build_avgexp():
    """AVG[r, r2] = 1/CL if rows r, r2 belong to the same batch ((t,b) order)."""
    m = np.zeros((N_ROWS, N_ROWS), np.float32)
    for r in range(N_ROWS):
        for r2 in range(N_ROWS):
            if r % BATCH == r2 % BATCH:
                m[r, r2] = 1.0 / CL
    return m


def _build_mj(counts):
    """Count-prescaled diagonal mask, (t,b) rec-row order.

    MJ[b*TOTAL_T + k, j*N_ROWS + (t*BATCH + b)] = 1/count_k  where t = k - j,
    so  mean_y = sum_j MJ[:, j-block] @ rec[:, j*ES:(j+1)*ES].
    """
    mj = np.zeros((BATCH * TOTAL_T, ERT * N_ROWS), np.float32)
    for j in range(ERT):
        for b in range(BATCH):
            for k in range(TOTAL_T):
                t = k - j
                if 0 <= t < CL:
                    mj[b * TOTAL_T + k, j * N_ROWS + t * BATCH + b] = 1.0 / counts[k]
    return mj


def _build_g(head_W, rev_w, counts):
    """Fused diag-mean + unfold + head (+ denorm scale) matrices, lane-packed.

    G[j*ES + e, t*WV + w*OUT + o] = head_W[(t+j-w)*ES + e, o] / count_{t+j}
                                    * 1/(rev_w[o] + eps^2)   for 0<=t+j-w<EMBED_Y2X
    so  head_acc[b, :] = sum_t rec[t*BATCH:(t+1)*BATCH, :] @ G[:, t*WV:(t+1)*WV].
    """
    inv_w = 1.0 / (rev_w + EPS * EPS)
    g = np.zeros((REC_TIMES, CL * WV), np.float32)
    for t in range(CL):
        for j in range(ERT):
            k = t + j
            for w in range(NUM_WIN):
                l = k - w
                if 0 <= l < EMBED_Y2X:
                    for e in range(ES):
                        for o in range(OUTPUT_SIZE):
                            g[j * ES + e, t * WV + w * OUTPUT_SIZE + o] = (
                                head_W[l * ES + e, o] / counts[k] * inv_w[o])
    return g


def _build_toeplitz_selectors():
    """0/1 selectors turning conv weights into banded (Toeplitz) matrices."""
    e1 = np.zeros((C1, KS, L0, C1 * L1), np.float32)
    e2 = np.zeros((C1, KS, C1 * L1, L2), np.float32)
    for c in range(C1):
        for k in range(KS):
            for t in range(L1):
                e1[c, k, t + k * DILATIONS[0], c * L1 + t] = 1.0
            for t in range(L2):
                e2[c, k, c * L1 + t + k * DILATIONS[1], t] = 1.0
    return e1, e2


_E1_NP, _E2_NP = _build_toeplitz_selectors()


def prepare_params(p):
    """One-time host prep: everything packed into ONE f32 [256,128] slab."""
    counts = _build_counts()
    rev_w = np.asarray(p["rev_w"], np.float32).reshape(-1)
    rev_b = np.asarray(p["rev_b"], np.float32).reshape(-1)
    head_W = np.asarray(p["head_W"], np.float32)
    head_b = np.asarray(p["head_b"], np.float32).reshape(-1)
    inv_w = 1.0 / (rev_w + EPS * EPS)

    t1 = np.einsum('ck,cksn->sn', np.asarray(p["tcn_w1"], np.float32), _E1_NP)
    t2 = np.einsum('ck,ckmn->mn', np.asarray(p["tcn_w2"], np.float32), _E2_NP)

    slab = np.zeros((SLAB_ROWS, LANES), np.float32)
    slab[R_VEC, 0:INPUT_SIZE] = rev_w
    slab[R_VEC, INPUT_SIZE:2 * INPUT_SIZE] = rev_b
    slab[R_VEC, 8:8 + ENC_OUT] = np.asarray(p["enc_b"], np.float32).reshape(-1)
    slab[R_VEC, 32:32 + L2] = np.asarray(p["tcn_b2"], np.float32)[0]
    slab[R_VEC, 64:64 + WV] = np.tile((head_b - rev_b) * inv_w, NUM_WIN)
    slab[R_B1, 0:C1 * L1] = np.repeat(np.asarray(p["tcn_b1"], np.float32), L1)
    slab[R_AVG:R_AVG + N_ROWS, 0:N_ROWS] = _build_avgexp()
    slab[R_ENCW:R_ENCW + INPUT_SIZE, 0:ENC_OUT] = np.asarray(p["enc_W"], np.float32)
    slab[R_T1:R_T1 + L0, 0:C1 * L1] = t1
    slab[R_T2:R_T2 + C1 * L1, 0:L2] = t2
    slab[R_MJ:R_MJ + BATCH * TOTAL_T, 0:ERT * N_ROWS] = _build_mj(counts)
    slab[R_G:R_G + REC_TIMES, 0:CL * WV] = _build_g(head_W, rev_w, counts)
    return jnp.asarray(slab)


# ------------------------------ fused kernel ----------------------------------
def fused_kernel(x_ref, slab_ref, o_ref):
    """Entire forward pass; rows are (t, b) so all row selections are contiguous.

    x_ref   : [N_ROWS, D]        input rows (t, b) row-major
    slab_ref: [256, 128]         packed parameters (one DMA)
    o_ref   : [40, 128]          rec[0:8,0:96], head[0:2,96:128], meany[8:38,0:8]
    """
    f32 = jnp.float32
    bf16 = jnp.bfloat16

    x2 = x_ref[...]                                                  # [8, 4]
    rev_w = slab_ref[R_VEC:R_VEC + 1, 0:INPUT_SIZE]                  # [1, 4]
    rev_b = slab_ref[R_VEC:R_VEC + 1, INPUT_SIZE:2 * INPUT_SIZE]     # [1, 4]
    enc_b = slab_ref[R_VEC:R_VEC + 1, 8:8 + ENC_OUT]                 # [1, 22]
    b2 = slab_ref[R_VEC:R_VEC + 1, 32:32 + L2]                       # [1, 16]
    bias_t = slab_ref[R_VEC:R_VEC + 1, 64:64 + WV]                   # [1, 32]
    b1 = slab_ref[R_B1:R_B1 + 1, 0:C1 * L1]                          # [1, 80]
    avgexp = slab_ref[R_AVG:R_AVG + N_ROWS, 0:N_ROWS]                # [8, 8]
    enc_w = slab_ref[R_ENCW:R_ENCW + INPUT_SIZE, 0:ENC_OUT]          # [4, 22]
    t1 = slab_ref[R_T1:R_T1 + L0, 0:C1 * L1]                         # [22, 80]
    t2 = slab_ref[R_T2:R_T2 + C1 * L1, 0:L2]                         # [80, 16]
    mj = slab_ref[R_MJ:R_MJ + BATCH * TOTAL_T, 0:ERT * N_ROWS]       # [30, 96]
    g = slab_ref[R_G:R_G + REC_TIMES, :].astype(bf16)                # [96, 128]

    # --- RevIN(norm) + encoder, all rows at once (prescaled averaging matmul) ---
    mu_rows = jnp.dot(avgexp, x2, preferred_element_type=f32)        # [8, 4]
    d = x2 - mu_rows
    var_rows = jnp.dot(avgexp, d * d, preferred_element_type=f32) + EPS
    inv_std = jax.lax.rsqrt(var_rows)                                # EUP
    std_rows = var_rows * inv_std                                    # sqrt(var+eps)
    xn = d * inv_std * rev_w + rev_b
    h0 = jnp.maximum(jnp.dot(xn, enc_w, preferred_element_type=f32) + enc_b, 0.0)

    # --- recurrent "one neuron" TCN: register-resident sliding window, f32 MXU ---
    tail = h0                                                        # [8, 22]
    outs = []
    for i in range(REC_ITER):
        h1 = jnp.maximum(jnp.dot(tail, t1, preferred_element_type=f32) + b1, 0.0)
        out_i = jnp.dot(h1, t2, preferred_element_type=f32) + b2     # [8, 16]
        outs.append(out_i)
        if i + 1 < REC_ITER:
            tail = jnp.concatenate([tail[:, L2:], out_i], axis=-1)   # [8, 22]
    rec = jnp.concatenate(outs, axis=-1)                             # [8, 96]
    o_ref[0:N_ROWS, 0:REC_TIMES] = rec                               # write-only

    # --- fused diag-mean + unfold + head (+ denorm scale folded into g), bf16 MXU
    recb = rec.astype(bf16)
    acc = jnp.dot(recb[0:BATCH, :], g[:, 0:WV], preferred_element_type=f32)
    for t in range(1, CL):
        acc = acc + jnp.dot(recb[t * BATCH:(t + 1) * BATCH, :],
                            g[:, t * WV:(t + 1) * WV],
                            preferred_element_type=f32)              # [2, 32]
    mu_b = mu_rows[0:BATCH, :]                                       # [2, 4]
    std_b = std_rows[0:BATCH, :]
    mu_t = jnp.concatenate([mu_b] * NUM_WIN, axis=-1)                # [2, 32]
    std_t = jnp.concatenate([std_b] * NUM_WIN, axis=-1)
    o_ref[0:BATCH, REC_TIMES:REC_TIMES + WV] = (acc + bias_t) * std_t + mu_t

    # --- diagonal masked mean for embedds_y (off the head critical path, f32) ---
    yb = jnp.dot(mj[:, 0:N_ROWS], rec[:, 0:ES], preferred_element_type=f32)
    for j in range(1, ERT):
        yb = yb + jnp.dot(mj[:, j * N_ROWS:(j + 1) * N_ROWS],
                          rec[:, j * ES:(j + 1) * ES],
                          preferred_element_type=f32)                # [30, 8]
    o_ref[N_ROWS:N_ROWS + BATCH * TOTAL_T, 0:ES] = yb


# ------------------------------ wrapper ---------------------------------------
@jax.jit
def forward(x, slab):
    # rows in (t, b) order so every in-kernel row selection is contiguous
    x_tb = jnp.transpose(x, (1, 0, 2)).reshape(N_ROWS, INPUT_SIZE)
    out = pl.pallas_call(
        fused_kernel,
        out_shape=jax.ShapeDtypeStruct((OUT_ROWS, LANES), jnp.float32),
        in_specs=[_VMEM(), _VMEM()],
        out_specs=_VMEM(),
    )(x_tb, slab)

    rec_tb = out[0:N_ROWS, 0:REC_TIMES]                              # (t, b) rows
    embedds = jnp.transpose(rec_tb.reshape(CL, BATCH, ERT, ES), (1, 0, 2, 3))
    embedds_y = out[N_ROWS:N_ROWS + BATCH * TOTAL_T, 0:ES].reshape(
        BATCH, TOTAL_T, ES)
    mean_outs = out[0:BATCH, REC_TIMES:REC_TIMES + WV].reshape(
        BATCH, NUM_WIN, OUTPUT_SIZE)
    return {"embedds": embedds,
            "embedds_y": embedds_y,
            "out": mean_outs[:, :CL],
            "pred_outs": mean_outs[:, CL:]}


def compute_same_embedds_y_list(embedds):
    """Consistency-loss bookkeeping; flag-gated out of the hot path.
    TODO(synk): exact container layout of embedding_to_vec_y's list output was
    not provided; returning per-absolute-time stacks of co-aligned embeddings."""
    out = []
    for k in range(TOTAL_T):
        cols = [embedds[:, t, k - t, :] for t in range(CL) if 0 <= k - t < ERT]
        out.append(jnp.stack(cols, axis=1))
    return out


# ------------------------------ pure-JAX reference ---------------------------
def reference(x, p):
    mu = jnp.mean(x, axis=1, keepdims=True)
    std = jnp.sqrt(jnp.mean((x - mu) ** 2, axis=1, keepdims=True) + EPS)
    xn = (x - mu) / std * p["rev_w"] + p["rev_b"]
    h0 = jnp.maximum(jnp.einsum("btd,dh->bth", xn, p["enc_W"]) + p["enc_b"], 0.0)
    tail = h0.reshape(N_ROWS, ENC_OUT)
    outs = []
    for _ in range(REC_ITER):
        h1 = []
        for c in range(C1):
            acc = sum(p["tcn_w1"][c, k] * tail[:, k:k + L1] for k in range(KS))
            h1.append(jnp.maximum(acc + p["tcn_b1"][c], 0.0))
        acc2 = sum(p["tcn_w2"][c, k] * h1[c][:, 2 * k:2 * k + L2]
                   for c in range(C1) for k in range(KS))
        out = acc2 + p["tcn_b2"][0]
        outs.append(out)
        tail = jnp.concatenate([tail[:, L2:], out], axis=-1)
    rec = jnp.concatenate(outs, axis=-1)
    embedds = rec.reshape(BATCH, CL, ERT, ES)

    kk = np.arange(TOTAL_T)[:, None, None]
    tt = np.arange(CL)[None, :, None]
    jj = np.arange(ERT)[None, None, :]
    mask_np = (tt + jj == kk).astype(np.float32)               # [T, CL, ERT]
    counts_np = mask_np.sum(axis=(1, 2))
    mean_y = jnp.einsum("ktj,btje->bke", jnp.asarray(mask_np), embedds)
    mean_y = mean_y / jnp.asarray(counts_np)[None, :, None]

    windows = jnp.stack([mean_y[:, w:w + EMBED_Y2X, :] for w in range(NUM_WIN)], 1)
    flat = windows.reshape(BATCH, NUM_WIN, HEAD_IN)
    y = jnp.einsum("bwf,fo->bwo", flat, p["head_W"]) + p["head_b"]
    y = (y - p["rev_b"]) / (p["rev_w"] + EPS * EPS)
    y = y * std + mu
    return embedds, mean_y, y


# ------------------------------ main ------------------------------------------
if __name__ == "__main__":
    key = jax.random.PRNGKey(0)
    ks = jax.random.split(key, 8)
    params = {
        "rev_w": jnp.ones((INPUT_SIZE,), jnp.float32),        # RevIN affine init
        "rev_b": jnp.zeros((INPUT_SIZE,), jnp.float32),
        "enc_W": 0.30 * jax.random.normal(ks[0], (INPUT_SIZE, ENC_OUT), jnp.float32),
        "enc_b": 0.10 * jax.random.normal(ks[1], (ENC_OUT,), jnp.float32),
        "tcn_w1": 0.35 * jax.random.normal(ks[2], (C1, KS), jnp.float32),
        "tcn_b1": 0.05 * jax.random.normal(ks[3], (C1,), jnp.float32),
        "tcn_w2": 0.30 * jax.random.normal(ks[4], (C1, KS), jnp.float32),
        "tcn_b2": 0.05 * jax.random.normal(ks[5], (1,), jnp.float32),
        "head_W": 0.20 * jax.random.normal(ks[6], (HEAD_IN, OUTPUT_SIZE), jnp.float32),
        "head_b": jnp.zeros((OUTPUT_SIZE,), jnp.float32),
    }
    x = jax.random.normal(ks[7], (BATCH, CL, INPUT_SIZE), jnp.float32)

    slab = prepare_params(params)               # one-time host-side prep
    out_dict = forward(x, slab)
    jax.block_until_ready(out_dict["out"])
    jax.block_until_ready(out_dict["pred_outs"])

    ref_embedds, ref_embedds_y, ref_mean_outs = reference(x, params)
    # embedds / embedds_y stay on the f32 path -> tight tolerance
    np.testing.assert_allclose(np.asarray(out_dict["embedds"]),
                               np.asarray(ref_embedds), rtol=2e-3, atol=2e-3)
    np.testing.assert_allclose(np.asarray(out_dict["embedds_y"]),
                               np.asarray(ref_embedds_y), rtol=2e-3, atol=2e-3)
    # head uses bf16 MXU operands (f32 accumulation) -> slightly looser tolerance
    np.testing.assert_allclose(
        np.concatenate([np.asarray(out_dict["out"]),
                        np.asarray(out_dict["pred_outs"])], axis=1),
        np.asarray(ref_mean_outs), rtol=5e-3, atol=5e-3)

    print("KERNEL_OK")
</pallas_src>

<mosaic_0001>
module attributes {stable_mosaic.version = 11 : i64} {
  func.func @fused_kernel(%arg0: memref<8x4xf32, #tpu.memory_space<vmem>>, %arg1: memref<256x128xf32, #tpu.memory_space<vmem>>, %arg2: memref<40x128xf32, #tpu.memory_space<vmem>>) attributes {dimension_semantics = [], scalar_prefetch = 0 : i64, scratch_operands = 0 : i64, tpu.core_type = #tpu.core_type<tc>} {
    %c0 = arith.constant 0 : index
    %c0_0 = arith.constant 0 : index
    %0 = vector.load %arg0[%c0, %c0_0] : memref<8x4xf32, #tpu.memory_space<vmem>>, vector<8x4xf32>
    %c0_1 = arith.constant 0 : index
    %c0_2 = arith.constant 0 : index
    %1 = vector.load %arg1[%c0_1, %c0_2] : memref<256x128xf32, #tpu.memory_space<vmem>>, vector<1x4xf32>
    %c0_3 = arith.constant 0 : index
    %c4 = arith.constant 4 : index
    %2 = vector.load %arg1[%c0_3, %c4] : memref<256x128xf32, #tpu.memory_space<vmem>>, vector<1x4xf32>
    %c0_4 = arith.constant 0 : index
    %c8 = arith.constant 8 : index
    %3 = vector.load %arg1[%c0_4, %c8] : memref<256x128xf32, #tpu.memory_space<vmem>>, vector<1x22xf32>
    %c0_5 = arith.constant 0 : index
    %c32 = arith.constant 32 : index
    %4 = vector.load %arg1[%c0_5, %c32] : memref<256x128xf32, #tpu.memory_space<vmem>>, vector<1x16xf32>
    %c0_6 = arith.constant 0 : index
    %c64 = arith.constant 64 : index
    %5 = vector.load %arg1[%c0_6, %c64] : memref<256x128xf32, #tpu.memory_space<vmem>>, vector<1x32xf32>
    %c1 = arith.constant 1 : index
    %c0_7 = arith.constant 0 : index
    %6 = vector.load %arg1[%c1, %c0_7] : memref<256x128xf32, #tpu.memory_space<vmem>>, vector<1x80xf32>
    %c8_8 = arith.constant 8 : index
    %c0_9 = arith.constant 0 : index
    %7 = vector.load %arg1[%c8_8, %c0_9] : memref<256x128xf32, #tpu.memory_space<vmem>>, vector<8x8xf32>
    %c16 = arith.constant 16 : index
    %c0_10 = arith.constant 0 : index
    %8 = vector.load %arg1[%c16, %c0_10] : memref<256x128xf32, #tpu.memory_space<vmem>>, vector<4x22xf32>
    %c24 = arith.constant 24 : index
    %c0_11 = arith.constant 0 : index
    %9 = vector.load %arg1[%c24, %c0_11] : memref<256x128xf32, #tpu.memory_space<vmem>>, vector<22x80xf32>
    %c48 = arith.constant 48 : index
    %c0_12 = arith.constant 0 : index
    %10 = vector.load %arg1[%c48, %c0_12] : memref<256x128xf32, #tpu.memory_space<vmem>>, vector<80x16xf32>
    %c128 = arith.constant 128 : index
    %c0_13 = arith.constant 0 : index
    %11 = vector.load %arg1[%c128, %c0_13] : memref<256x128xf32, #tpu.memory_space<vmem>>, vector<30x96xf32>
    %c160 = arith.constant 160 : index
    %c0_14 = arith.constant 0 : index
    %12 = vector.load %arg1[%c160, %c0_14] : memref<256x128xf32, #tpu.memory_space<vmem>>, vector<96x128xf32>
    %13 = arith.truncf %12 : vector<96x128xf32> to vector<96x128xbf16>
    %cst = arith.constant dense<0.000000e+00> : vector<8x4xf32>
    %14 = tpu.matmul %7, %0, %cst {dimension_numbers = #tpu.dot_dimension_numbers<[1], [0], [0], [1], [0, 0, 1, 1], [], []>} : vector<8x8xf32>, vector<8x4xf32>, vector<8x4xf32> -> vector<8x4xf32>
    %15 = arith.subf %0, %14 : vector<8x4xf32>
    %16 = arith.mulf %15, %15 : vector<8x4xf32>
    %cst_15 = arith.constant dense<0.000000e+00> : vector<8x4xf32>
    %17 = tpu.matmul %7, %16, %cst_15 {dimension_numbers = #tpu.dot_dimension_numbers<[1], [0], [0], [1], [0, 0, 1, 1], [], []>} : vector<8x8xf32>, vector<8x4xf32>, vector<8x4xf32> -> vector<8x4xf32>
    %cst_16 = arith.constant 9.99999974E-6 : f32
    %18 = vector.broadcast %cst_16 : f32 to vector<8x4xf32>
    %19 = arith.addf %17, %18 : vector<8x4xf32>
    %20 = math.rsqrt %19 : vector<8x4xf32>
    %21 = arith.mulf %19, %20 : vector<8x4xf32>
    %22 = arith.mulf %15, %20 : vector<8x4xf32>
    %23 = vector.broadcast %1 : vector<1x4xf32> to vector<8x4xf32>
    %24 = arith.mulf %22, %23 : vector<8x4xf32>
    %25 = vector.broadcast %2 : vector<1x4xf32> to vector<8x4xf32>
    %26 = arith.addf %24, %25 : vector<8x4xf32>
    %cst_17 = arith.constant dense<0.000000e+00> : vector<8x22xf32>
    %27 = tpu.matmul %26, %8, %cst_17 {dimension_numbers = #tpu.dot_dimension_numbers<[1], [0], [0], [1], [0, 0, 1, 1], [], []>} : vector<8x4xf32>, vector<4x22xf32>, vector<8x22xf32> -> vector<8x22xf32>
    %28 = vector.broadcast %3 : vector<1x22xf32> to vector<8x22xf32>
    %29 = arith.addf %27, %28 : vector<8x22xf32>
    %cst_18 = arith.constant 0.000000e+00 : f32
    %30 = vector.broadcast %cst_18 : f32 to vector<8x22xf32>
    %31 = arith.maximumf %29, %30 : vector<8x22xf32>
    %cst_19 = arith.constant dense<0.000000e+00> : vector<8x80xf32>
    %32 = tpu.matmul %31, %9, %cst_19 {dimension_numbers = #tpu.dot_dimension_numbers<[1], [0], [0], [1], [0, 0, 1, 1], [], []>} : vector<8x22xf32>, vector<22x80xf32>, vector<8x80xf32> -> vector<8x80xf32>
    %33 = vector.broadcast %6 : vector<1x80xf32> to vector<8x80xf32>
    %34 = arith.addf %32, %33 : vector<8x80xf32>
    %cst_20 = arith.constant 0.000000e+00 : f32
    %35 = vector.broadcast %cst_20 : f32 to vector<8x80xf32>
    %36 = arith.maximumf %34, %35 : vector<8x80xf32>
    %cst_21 = arith.constant dense<0.000000e+00> : vector<8x16xf32>
    %37 = tpu.matmul %36, %10, %cst_21 {dimension_numbers = #tpu.dot_dimension_numbers<[1], [0], [0], [1], [0, 0, 1, 1], [], []>} : vector<8x80xf32>, vector<80x16xf32>, vector<8x16xf32> -> vector<8x16xf32>
    %38 = vector.broadcast %4 : vector<1x16xf32> to vector<8x16xf32>
    %39 = arith.addf %37, %38 : vector<8x16xf32>
    %40 = vector.extract_strided_slice %31 {offsets = [0, 16], sizes = [8, 6], strides = [1, 1]} : vector<8x22xf32> to vector<8x6xf32>
    %41 = tpu.concatenate %40, %39 in 1 : vector<8x6xf32>, vector<8x16xf32> -> vector<8x22xf32>
    %cst_22 = arith.constant dense<0.000000e+00> : vector<8x80xf32>
    %42 = tpu.matmul %41, %9, %cst_22 {dimension_numbers = #tpu.dot_dimension_numbers<[1], [0], [0], [1], [0, 0, 1, 1], [], []>} : vector<8x22xf32>, vector<22x80xf32>, vector<8x80xf32> -> vector<8x80xf32>
    %43 = vector.broadcast %6 : vector<1x80xf32> to vector<8x80xf32>
    %44 = arith.addf %42, %43 : vector<8x80xf32>
    %cst_23 = arith.constant 0.000000e+00 : f32
    %45 = vector.broadcast %cst_23 : f32 to vector<8x80xf32>
    %46 = arith.maximumf %44, %45 : vector<8x80xf32>
    %cst_24 = arith.constant dense<0.000000e+00> : vector<8x16xf32>
    %47 = tpu.matmul %46, %10, %cst_24 {dimension_numbers = #tpu.dot_dimension_numbers<[1], [0], [0], [1], [0, 0, 1, 1], [], []>} : vector<8x80xf32>, vector<80x16xf32>, vector<8x16xf32> -> vector<8x16xf32>
    %48 = vector.broadcast %4 : vector<1x16xf32> to vector<8x16xf32>
    %49 = arith.addf %47, %48 : vector<8x16xf32>
    %50 = vector.extract_strided_slice %41 {offsets = [0, 16], sizes = [8, 6], strides = [1, 1]} : vector<8x22xf32> to vector<8x6xf32>
    %51 = tpu.concatenate %50, %49 in 1 : vector<8x6xf32>, vector<8x16xf32> -> vector<8x22xf32>
    %cst_25 = arith.constant dense<0.000000e+00> : vector<8x80xf32>
    %52 = tpu.matmul %51, %9, %cst_25 {dimension_numbers = #tpu.dot_dimension_numbers<[1], [0], [0], [1], [0, 0, 1, 1], [], []>} : vector<8x22xf32>, vector<22x80xf32>, vector<8x80xf32> -> vector<8x80xf32>
    %53 = vector.broadcast %6 : vector<1x80xf32> to vector<8x80xf32>
    %54 = arith.addf %52, %53 : vector<8x80xf32>
    %cst_26 = arith.constant 0.000000e+00 : f32
    %55 = vector.broadcast %cst_26 : f32 to vector<8x80xf32>
    %56 = arith.maximumf %54, %55 : vector<8x80xf32>
    %cst_27 = arith.constant dense<0.000000e+00> : vector<8x16xf32>
    %57 = tpu.matmul %56, %10, %cst_27 {dimension_numbers = #tpu.dot_dimension_numbers<[1], [0], [0], [1], [0, 0, 1, 1], [], []>} : vector<8x80xf32>, vector<80x16xf32>, vector<8x16xf32> -> vector<8x16xf32>
    %58 = vector.broadcast %4 : vector<1x16xf32> to vector<8x16xf32>
    %59 = arith.addf %57, %58 : vector<8x16xf32>
    %60 = vector.extract_strided_slice %51 {offsets = [0, 16], sizes = [8, 6], strides = [1, 1]} : vector<8x22xf32> to vector<8x6xf32>
    %61 = tpu.concatenate %60, %59 in 1 : vector<8x6xf32>, vector<8x16xf32> -> vector<8x22xf32>
    %cst_28 = arith.constant dense<0.000000e+00> : vector<8x80xf32>
    %62 = tpu.matmul %61, %9, %cst_28 {dimension_numbers = #tpu.dot_dimension_numbers<[1], [0], [0], [1], [0, 0, 1, 1], [], []>} : vector<8x22xf32>, vector<22x80xf32>, vector<8x80xf32> -> vector<8x80xf32>
    %63 = vector.broadcast %6 : vector<1x80xf32> to vector<8x80xf32>
    %64 = arith.addf %62, %63 : vector<8x80xf32>
    %cst_29 = arith.constant 0.000000e+00 : f32
    %65 = vector.broadcast %cst_29 : f32 to vector<8x80xf32>
    %66 = arith.maximumf %64, %65 : vector<8x80xf32>
    %cst_30 = arith.constant dense<0.000000e+00> : vector<8x16xf32>
    %67 = tpu.matmul %66, %10, %cst_30 {dimension_numbers = #tpu.dot_dimension_numbers<[1], [0], [0], [1], [0, 0, 1, 1], [], []>} : vector<8x80xf32>, vector<80x16xf32>, vector<8x16xf32> -> vector<8x16xf32>
    %68 = vector.broadcast %4 : vector<1x16xf32> to vector<8x16xf32>
    %69 = arith.addf %67, %68 : vector<8x16xf32>
    %70 = vector.extract_strided_slice %61 {offsets = [0, 16], sizes = [8, 6], strides = [1, 1]} : vector<8x22xf32> to vector<8x6xf32>
    %71 = tpu.concatenate %70, %69 in 1 : vector<8x6xf32>, vector<8x16xf32> -> vector<8x22xf32>
    %cst_31 = arith.constant dense<0.000000e+00> : vector<8x80xf32>
    %72 = tpu.matmul %71, %9, %cst_31 {dimension_numbers = #tpu.dot_dimension_numbers<[1], [0], [0], [1], [0, 0, 1, 1], [], []>} : vector<8x22xf32>, vector<22x80xf32>, vector<8x80xf32> -> vector<8x80xf32>
    %73 = vector.broadcast %6 : vector<1x80xf32> to vector<8x80xf32>
    %74 = arith.addf %72, %73 : vector<8x80xf32>
    %cst_32 = arith.constant 0.000000e+00 : f32
    %75 = vector.broadcast %cst_32 : f32 to vector<8x80xf32>
    %76 = arith.maximumf %74, %75 : vector<8x80xf32>
    %cst_33 = arith.constant dense<0.000000e+00> : vector<8x16xf32>
    %77 = tpu.matmul %76, %10, %cst_33 {dimension_numbers = #tpu.dot_dimension_numbers<[1], [0], [0], [1], [0, 0, 1, 1], [], []>} : vector<8x80xf32>, vector<80x16xf32>, vector<8x16xf32> -> vector<8x16xf32>
    %78 = vector.broadcast %4 : vector<1x16xf32> to vector<8x16xf32>
    %79 = arith.addf %77, %78 : vector<8x16xf32>
    %80 = vector.extract_strided_slice %71 {offsets = [0, 16], sizes = [8, 6], strides = [1, 1]} : vector<8x22xf32> to vector<8x6xf32>
    %81 = tpu.concatenate %80, %79 in 1 : vector<8x6xf32>, vector<8x16xf32> -> vector<8x22xf32>
    %cst_34 = arith.constant dense<0.000000e+00> : vector<8x80xf32>
    %82 = tpu.matmul %81, %9, %cst_34 {dimension_numbers = #tpu.dot_dimension_numbers<[1], [0], [0], [1], [0, 0, 1, 1], [], []>} : vector<8x22xf32>, vector<22x80xf32>, vector<8x80xf32> -> vector<8x80xf32>
    %83 = vector.broadcast %6 : vector<1x80xf32> to vector<8x80xf32>
    %84 = arith.addf %82, %83 : vector<8x80xf32>
    %cst_35 = arith.constant 0.000000e+00 : f32
    %85 = vector.broadcast %cst_35 : f32 to vector<8x80xf32>
    %86 = arith.maximumf %84, %85 : vector<8x80xf32>
    %cst_36 = arith.constant dense<0.000000e+00> : vector<8x16xf32>
    %87 = tpu.matmul %86, %10, %cst_36 {dimension_numbers = #tpu.dot_dimension_numbers<[1], [0], [0], [1], [0, 0, 1, 1], [], []>} : vector<8x80xf32>, vector<80x16xf32>, vector<8x16xf32> -> vector<8x16xf32>
    %88 = vector.broadcast %4 : vector<1x16xf32> to vector<8x16xf32>
    %89 = arith.addf %87, %88 : vector<8x16xf32>
    %90 = tpu.concatenate %39, %49, %59, %69, %79, %89 in 1 : vector<8x16xf32>, vector<8x16xf32>, vector<8x16xf32>, vector<8x16xf32>, vector<8x16xf32>, vector<8x16xf32> -> vector<8x96xf32>
    %c0_37 = arith.constant 0 : index
    %c0_38 = arith.constant 0 : index
    %91 = vector.load %arg2[%c0_37, %c0_38] : memref<40x128xf32, #tpu.memory_space<vmem>>, vector<8x96xf32>
    tpu.vector_store %arg2[%c0_37, %c0_38], %90 {strides = array<i32>} : memref<40x128xf32, #tpu.memory_space<vmem>>, vector<8x96xf32>,
    %92 = arith.truncf %90 : vector<8x96xf32> to vector<8x96xbf16>
    %93 = vector.extract_strided_slice %92 {offsets = [0, 0], sizes = [2, 96], strides = [1, 1]} : vector<8x96xbf16> to vector<2x96xbf16>
    %94 = vector.extract_strided_slice %13 {offsets = [0, 0], sizes = [96, 32], strides = [1, 1]} : vector<96x128xbf16> to vector<96x32xbf16>
    %cst_39 = arith.constant dense<0.000000e+00> : vector<2x32xf32>
    %95 = tpu.matmul %93, %94, %cst_39 {dimension_numbers = #tpu.dot_dimension_numbers<[1], [0], [0], [1], [0, 0, 1, 1], [], []>} : vector<2x96xbf16>, vector<96x32xbf16>, vector<2x32xf32> -> vector<2x32xf32>
    %96 = vector.extract_strided_slice %92 {offsets = [2, 0], sizes = [2, 96], strides = [1, 1]} : vector<8x96xbf16> to vector<2x96xbf16>
    %97 = vector.extract_strided_slice %13 {offsets = [0, 32], sizes = [96, 32], strides = [1, 1]} : vector<96x128xbf16> to vector<96x32xbf16>
    %cst_40 = arith.constant dense<0.000000e+00> : vector<2x32xf32>
    %98 = tpu.matmul %96, %97, %cst_40 {dimension_numbers = #tpu.dot_dimension_numbers<[1], [0], [0], [1], [0, 0, 1, 1], [], []>} : vector<2x96xbf16>, vector<96x32xbf16>, vector<2x32xf32> -> vector<2x32xf32>
    %99 = arith.addf %95, %98 : vector<2x32xf32>
    %100 = vector.extract_strided_slice %92 {offsets = [4, 0], sizes = [2, 96], strides = [1, 1]} : vector<8x96xbf16> to vector<2x96xbf16>
    %101 = vector.extract_strided_slice %13 {offsets = [0, 64], sizes = [96, 32], strides = [1, 1]} : vector<96x128xbf16> to vector<96x32xbf16>
    %cst_41 = arith.constant dense<0.000000e+00> : vector<2x32xf32>
    %102 = tpu.matmul %100, %101, %cst_41 {dimension_numbers = #tpu.dot_dimension_numbers<[1], [0], [0], [1], [0, 0, 1, 1], [], []>} : vector<2x96xbf16>, vector<96x32xbf16>, vector<2x32xf32> -> vector<2x32xf32>
    %103 = arith.addf %99, %102 : vector<2x32xf32>
    %104 = vector.extract_strided_slice %92 {offsets = [6, 0], sizes = [2, 96], strides = [1, 1]} : vector<8x96xbf16> to vector<2x96xbf16>
    %105 = vector.extract_strided_slice %13 {offsets = [0, 96], sizes = [96, 32], strides = [1, 1]} : vector<96x128xbf16> to vector<96x32xbf16>
    %cst_42 = arith.constant dense<0.000000e+00> : vector<2x32xf32>
    %106 = tpu.matmul %104, %105, %cst_42 {dimension_numbers = #tpu.dot_dimension_numbers<[1], [0], [0], [1], [0, 0, 1, 1], [], []>} : vector<2x96xbf16>, vector<96x32xbf16>, vector<2x32xf32> -> vector<2x32xf32>
    %107 = arith.addf %103, %106 : vector<2x32xf32>
    %108 = vector.extract_strided_slice %14 {offsets = [0, 0], sizes = [2, 4], strides = [1, 1]} : vector<8x4xf32> to vector<2x4xf32>
    %109 = vector.extract_strided_slice %21 {offsets = [0, 0], sizes = [2, 4], strides = [1, 1]} : vector<8x4xf32> to vector<2x4xf32>
    %110 = tpu.concatenate %108, %108, %108, %108, %108, %108, %108, %108 in 1 : vector<2x4xf32>, vector<2x4xf32>, vector<2x4xf32>, vector<2x4xf32>, vector<2x4xf32>, vector<2x4xf32>, vector<2x4xf32>, vector<2x4xf32> -> vector<2x32xf32>
    %111 = tpu.concatenate %109, %109, %109, %109, %109, %109, %109, %109 in 1 : vector<2x4xf32>, vector<2x4xf32>, vector<2x4xf32>, vector<2x4xf32>, vector<2x4xf32>, vector<2x4xf32>, vector<2x4xf32>, vector<2x4xf32> -> vector<2x32xf32>
    %112 = vector.broadcast %5 : vector<1x32xf32> to vector<2x32xf32>
    %113 = arith.addf %107, %112 : vector<2x32xf32>
    %114 = arith.mulf %113, %111 : vector<2x32xf32>
    %115 = arith.addf %114, %110 : vector<2x32xf32>
    %c0_43 = arith.constant 0 : index
    %c96 = arith.constant 96 : index
    %116 = vector.load %arg2[%c0_43, %c96] : memref<40x128xf32, #tpu.memory_space<vmem>>, vector<2x32xf32>
    tpu.vector_store %arg2[%c0_43, %c96], %115 {strides = array<i32>} : memref<40x128xf32, #tpu.memory_space<vmem>>, vector<2x32xf32>,
    %117 = vector.extract_strided_slice %11 {offsets = [0, 0], sizes = [30, 8], strides = [1, 1]} : vector<30x96xf32> to vector<30x8xf32>
    %118 = vector.extract_strided_slice %90 {offsets = [0, 0], sizes = [8, 8], strides = [1, 1]} : vector<8x96xf32> to vector<8x8xf32>
    %cst_44 = arith.constant dense<0.000000e+00> : vector<30x8xf32>
    %119 = tpu.matmul %117, %118, %cst_44 {dimension_numbers = #tpu.dot_dimension_numbers<[1], [0], [0], [1], [0, 0, 1, 1], [], []>} : vector<30x8xf32>, vector<8x8xf32>, vector<30x8xf32> -> vector<30x8xf32>
    %120 = vector.extract_strided_slice %11 {offsets = [0, 8], sizes = [30, 8], strides = [1, 1]} : vector<30x96xf32> to vector<30x8xf32>
    %121 = vector.extract_strided_slice %90 {offsets = [0, 8], sizes = [8, 8], strides = [1, 1]} : vector<8x96xf32> to vector<8x8xf32>
    %cst_45 = arith.constant dense<0.000000e+00> : vector<30x8xf32>
    %122 = tpu.matmul %120, %121, %cst_45 {dimension_numbers = #tpu.dot_dimension_numbers<[1], [0], [0], [1], [0, 0, 1, 1], [], []>} : vector<30x8xf32>, vector<8x8xf32>, vector<30x8xf32> -> vector<30x8xf32>
    %123 = arith.addf %119, %122 : vector<30x8xf32>
    %124 = vector.extract_strided_slice %11 {offsets = [0, 16], sizes = [30, 8], strides = [1, 1]} : vector<30x96xf32> to vector<30x8xf32>
    %125 = vector.extract_strided_slice %90 {offsets = [0, 16], sizes = [8, 8], strides = [1, 1]} : vector<8x96xf32> to vector<8x8xf32>
    %cst_46 = arith.constant dense<0.000000e+00> : vector<30x8xf32>
    %126 = tpu.matmul %124, %125, %cst_46 {dimension_numbers = #tpu.dot_dimension_numbers<[1], [0], [0], [1], [0, 0, 1, 1], [], []>} : vector<30x8xf32>, vector<8x8xf32>, vector<30x8xf32> -> vector<30x8xf32>
    %127 = arith.addf %123, %126 : vector<30x8xf32>
    %128 = vector.extract_strided_slice %11 {offsets = [0, 24], sizes = [30, 8], strides = [1, 1]} : vector<30x96xf32> to vector<30x8xf32>
    %129 = vector.extract_strided_slice %90 {offsets = [0, 24], sizes = [8, 8], strides = [1, 1]} : vector<8x96xf32> to vector<8x8xf32>
    %cst_47 = arith.constant dense<0.000000e+00> : vector<30x8xf32>
    %130 = tpu.matmul %128, %129, %cst_47 {dimension_numbers = #tpu.dot_dimension_numbers<[1], [0], [0], [1], [0, 0, 1, 1], [], []>} : vector<30x8xf32>, vector<8x8xf32>, vector<30x8xf32> -> vector<30x8xf32>
    %131 = arith.addf %127, %130 : vector<30x8xf32>
    %132 = vector.extract_strided_slice %11 {offsets = [0, 32], sizes = [30, 8], strides = [1, 1]} : vector<30x96xf32> to vector<30x8xf32>
    %133 = vector.extract_strided_slice %90 {offsets = [0, 32], sizes = [8, 8], strides = [1, 1]} : vector<8x96xf32> to vector<8x8xf32>
    %cst_48 = arith.constant dense<0.000000e+00> : vector<30x8xf32>
    %134 = tpu.matmul %132, %133, %cst_48 {dimension_numbers = #tpu.dot_dimension_numbers<[1], [0], [0], [1], [0, 0, 1, 1], [], []>} : vector<30x8xf32>, vector<8x8xf32>, vector<30x8xf32> -> vector<30x8xf32>
    %135 = arith.addf %131, %134 : vector<30x8xf32>
    %136 = vector.extract_strided_slice %11 {offsets = [0, 40], sizes = [30, 8], strides = [1, 1]} : vector<30x96xf32> to vector<30x8xf32>
    %137 = vector.extract_strided_slice %90 {offsets = [0, 40], sizes = [8, 8], strides = [1, 1]} : vector<8x96xf32> to vector<8x8xf32>
    %cst_49 = arith.constant dense<0.000000e+00> : vector<30x8xf32>
    %138 = tpu.matmul %136, %137, %cst_49 {dimension_numbers = #tpu.dot_dimension_numbers<[1], [0], [0], [1], [0, 0, 1, 1], [], []>} : vector<30x8xf32>, vector<8x8xf32>, vector<30x8xf32> -> vector<30x8xf32>
    %139 = arith.addf %135, %138 : vector<30x8xf32>
    %140 = vector.extract_strided_slice %11 {offsets = [0, 48], sizes = [30, 8], strides = [1, 1]} : vector<30x96xf32> to vector<30x8xf32>
    %141 = vector.extract_strided_slice %90 {offsets = [0, 48], sizes = [8, 8], strides = [1, 1]} : vector<8x96xf32> to vector<8x8xf32>
    %cst_50 = arith.constant dense<0.000000e+00> : vector<30x8xf32>
    %142 = tpu.matmul %140, %141, %cst_50 {dimension_numbers = #tpu.dot_dimension_numbers<[1], [0], [0], [1], [0, 0, 1, 1], [], []>} : vector<30x8xf32>, vector<8x8xf32>, vector<30x8xf32> -> vector<30x8xf32>
    %143 = arith.addf %139, %142 : vector<30x8xf32>
    %144 = vector.extract_strided_slice %11 {offsets = [0, 56], sizes = [30, 8], strides = [1, 1]} : vector<30x96xf32> to vector<30x8xf32>
    %145 = vector.extract_strided_slice %90 {offsets = [0, 56], sizes = [8, 8], strides = [1, 1]} : vector<8x96xf32> to vector<8x8xf32>
    %cst_51 = arith.constant dense<0.000000e+00> : vector<30x8xf32>
    %146 = tpu.matmul %144, %145, %cst_51 {dimension_numbers = #tpu.dot_dimension_numbers<[1], [0], [0], [1], [0, 0, 1, 1], [], []>} : vector<30x8xf32>, vector<8x8xf32>, vector<30x8xf32> -> vector<30x8xf32>
    %147 = arith.addf %143, %146 : vector<30x8xf32>
    %148 = vector.extract_strided_slice %11 {offsets = [0, 64], sizes = [30, 8], strides = [1, 1]} : vector<30x96xf32> to vector<30x8xf32>
    %149 = vector.extract_strided_slice %90 {offsets = [0, 64], sizes = [8, 8], strides = [1, 1]} : vector<8x96xf32> to vector<8x8xf32>
    %cst_52 = arith.constant dense<0.000000e+00> : vector<30x8xf32>
    %150 = tpu.matmul %148, %149, %cst_52 {dimension_numbers = #tpu.dot_dimension_numbers<[1], [0], [0], [1], [0, 0, 1, 1], [], []>} : vector<30x8xf32>, vector<8x8xf32>, vector<30x8xf32> -> vector<30x8xf32>
    %151 = arith.addf %147, %150 : vector<30x8xf32>
    %152 = vector.extract_strided_slice %11 {offsets = [0, 72], sizes = [30, 8], strides = [1, 1]} : vector<30x96xf32> to vector<30x8xf32>
    %153 = vector.extract_strided_slice %90 {offsets = [0, 72], sizes = [8, 8], strides = [1, 1]} : vector<8x96xf32> to vector<8x8xf32>
    %cst_53 = arith.constant dense<0.000000e+00> : vector<30x8xf32>
    %154 = tpu.matmul %152, %153, %cst_53 {dimension_numbers = #tpu.dot_dimension_numbers<[1], [0], [0], [1], [0, 0, 1, 1], [], []>} : vector<30x8xf32>, vector<8x8xf32>, vector<30x8xf32> -> vector<30x8xf32>
    %155 = arith.addf %151, %154 : vector<30x8xf32>
    %156 = vector.extract_strided_slice %11 {offsets = [0, 80], sizes = [30, 8], strides = [1, 1]} : vector<30x96xf32> to vector<30x8xf32>
    %157 = vector.extract_strided_slice %90 {offsets = [0, 80], sizes = [8, 8], strides = [1, 1]} : vector<8x96xf32> to vector<8x8xf32>
    %cst_54 = arith.constant dense<0.000000e+00> : vector<30x8xf32>
    %158 = tpu.matmul %156, %157, %cst_54 {dimension_numbers = #tpu.dot_dimension_numbers<[1], [0], [0], [1], [0, 0, 1, 1], [], []>} : vector<30x8xf32>, vector<8x8xf32>, vector<30x8xf32> -> vector<30x8xf32>
    %159 = arith.addf %155, %158 : vector<30x8xf32>
    %160 = vector.extract_strided_slice %11 {offsets = [0, 88], sizes = [30, 8], strides = [1, 1]} : vector<30x96xf32> to vector<30x8xf32>
    %161 = vector.extract_strided_slice %90 {offsets = [0, 88], sizes = [8, 8], strides = [1, 1]} : vector<8x96xf32> to vector<8x8xf32>
    %cst_55 = arith.constant dense<0.000000e+00> : vector<30x8xf32>
    %162 = tpu.matmul %160, %161, %cst_55 {dimension_numbers = #tpu.dot_dimension_numbers<[1], [0], [0], [1], [0, 0, 1, 1], [], []>} : vector<30x8xf32>, vector<8x8xf32>, vector<30x8xf32> -> vector<30x8xf32>
    %163 = arith.addf %159, %162 : vector<30x8xf32>
    %c8_56 = arith.constant 8 : index
    %c0_57 = arith.constant 0 : index
    %164 = vector.load %arg2[%c8_56, %c0_57] : memref<40x128xf32, #tpu.memory_space<vmem>>, vector<30x8xf32>
    tpu.vector_store %arg2[%c8_56, %c0_57], %163 {strides = array<i32>} : memref<40x128xf32, #tpu.memory_space<vmem>>, vector<30x8xf32>,
    return
  }
}

</mosaic_0001>

<bundles_post_ra>
// kernel: forward.1
= control target key start
LH: loop header
LB: loop body
LE: loop exit
PB: predicated region body
PF: predicated region fallthrough
CT: control target
= control target key end

     0   :  { %7 = vsyncpa [#allocation3], 0  ;;  %s3552_s9 = smov [#allocation2]   ;;  %s4265_s0 = inlined_call_operand.vmem [shape: f32[8,4], index: 0, kind: input, shape index: {}]   ;;  %s4266_s1 = inlined_call_operand.hbm [shape: f32[256,128], index: 1, kind: input, shape index: {}]   ;;  %s4267_s2 = inlined_call_operand.vmem [shape: f32[40,128], index: 2, kind: output, shape index: {}]  }
   0x1   :  { %s15_s10 = sshll.u32 %s3552_s9, 4  ;;  %s16_s10 = int_to_ptr.vmem [resolvable:$true] %s15_s10 }
   0x2   :  { %s3538_s11 = scalar_lea.vmem %s16_s10, 4096  ;;  %p3543_p1 = scmp.lt.s32.totalorder %s16_s10, %s16_s10 }
   0x3   :  { %p3539_p0 = scmp.ne.s32.totalorder %s16_s10, %s3538_s11  ;;  %p3544_p2 = scmp.lt.s32.totalorder %s3538_s11, %s3538_s11 }
   0x5   :  { %p3545_p3 = por %p3544_p2, %p3543_p1 }
   0x7   :  { %p3546_p4 = pnand %p3545_p3, %p3539_p0 }
   0x9   :  { %3549 = shalt.err (!%p3546_p4)
}
   0xa   :  { %s3553_s12 = smov 128   ;;  %s3554_s13 = smov 8  }
   0xb   :  { %21 = dma.hbm_to_vmem [thread:$0]  %s4266_s1, 4096, %s16_s10, [#allocation3], %s3553_s12, %s3553_s12, %s3554_s13  }
   0xc   :  { %3550 = dma.done.wait [#allocation3], 4096  }
   0xd   :  { %3551 = vsyncadd [#allocation3], 4294963200  ;;  %v3555_v0 = vmov 0.0   ;;  %vm3556_vm0 = vmmov 0   ;;  %vm66_vm1 = vcmask 64512   ;;  %v26_v1 = vld [vmem:[%s4265_s0] sm:$0xff] }
   0xe   :  { %3135 = vmatprep.subr.mxu1 %v3555_v0  ;;  %3137 = vmatprep.mubr.msk.f32.mxu1 %vm3556_vm0, %v3555_v0  ;;  %v29_v2 = vld [vmem:[#allocation2 + $0x8] sm:$0xff]  ;;  %v2877_v3 = vld [vmem:[#allocation2] ss:$0 sm:$0xff]  ;;  %s3557_s1 = smov 124   ;;  %v30_v8 = vld [vmem:[#allocation2 + $0x10] sm:$0xf] }
   0xf   :  { %3145 = vmatprep.subr.mxu0 %v3555_v0  ;;  %3147 = vmatprep.mubr.msk.f32.mxu0 %vm3556_vm0, %v3555_v0  ;;  %vm232_vm2 = vcmask 1043456   ;;  %s3558_s0 = smov 120   ;;  %vm228_vm3 = vcmask 31744   ;;  %v3623_v18 = vld [vmem:[#allocation2 + $0x28] sm:$0x3f]  ;;  %vm315_vm4 = vcmask 1045504  }
  0x10   :  { %3136 = vmatpush3.msra.mxu1 %v26_v1  ;;  %221 = vrot.lane.b32.xlu0 %v2877_v3, %s3557_s1  ;;  %s3559_s18 = smov 96   ;;  %v3629_v19 = vld [vmem:[#allocation2 + $0x20] sm:$0xff]  ;;  %v3633_v20 = vld [vmem:[#allocation2 + $0x18] sm:$0xff]  ;;  %v3639_v22 = vld [vmem:[#allocation2 + $0x70] sm:$0xff]  ;;  %vm311_vm5 = vcmask 179200   ;;  %s3560_s19 = smov 112  }
  0x11   :  { %3138 = vmatmul.mubr.msk.f32.vlgmr.msra.gmra.mxu1 %vm66_vm1, %v29_v2  ;;  %3140 = vmatprep.subr.mxu1 %v3555_v0  ;;  %v3637_v21 = vld [vmem:[#allocation2 + $0x78] sm:$0xff]  ;;  %v3643_v23 = vld [vmem:[#allocation2 + $0x68] sm:$0xff]  ;;  %v3647_v24 = vld [vmem:[#allocation2 + $0x60] sm:$0xff]  ;;  %vm393_vm6 = vcmask 654336   ;;  %s3561_s20 = smov 6   ;;  %vm474_vm7 = vcmask 48128  }
  0x12   :  { %3142 = vmatprep.mubr.msk.f32.mxu1 %vm3556_vm0, %v3555_v0  ;;  %3146 = vmatpush3.msk.msra.mxu0 %vm232_vm2, %v30_v8  ;;  %v3651_v25 = vld [vmem:[#allocation2 + $0x58] sm:$0xff]  ;;  %v3655_v27 = vld [vmem:[#allocation2 + $0x50] sm:$0xff]  ;;  %v3659_v30 = vld [vmem:[#allocation2 + $0x48] sm:$0xff]  ;;  %s3562_s21 = smov 16   ;;  %s3563_s22 = smov 48   ;;  %vm1259_vm8 = vcmask 130048  }
  0x13   :  { %3159 = vmatprep.subr.mxu0 %v3555_v0  ;;  %390 = vrot.lane.b32.xlu1 %v2877_v3, %s3559_s18  ;;  %v3676_v33 = vld [vmem:[#allocation2 + $0x40] sm:$0xff]  ;;  %v3680_v34 = vld [vmem:[#allocation2 + $0x38] sm:$0xff]  ;;  %v3684_v35 = vld [vmem:[#allocation2 + $0x30] sm:$0xff]  ;;  %s3564_s23 = smov 32   ;;  %s3565_s24 = smov 64   ;;  %vm1261_vm9 = vcmask 261120  }
  0x14   :  { %225 = vrot.lane.b32.xlu0 %v2877_v3, %s3558_s0  ;;  %v3688_v36 = vld [vmem:[#allocation2 + $0x1] ss:$0 sm:$0xff]  ;;  %s3566_s25 = smov 104   ;;  %s3567_s26 = smov 88   ;;  %vm1263_vm10 = vcmask 392192   ;;  %vm1265_vm11 = vcmask 523264  }
  0x15   :  { %s3568_s27 = smov 80   ;;  %s3569_s28 = smov 72   ;;  %vm1268_vm12 = vcmask 785408   ;;  %vm1533_vm13 = vcmask 97280   ;;  %vm1536_vm14 = vcmask 162816   ;;  %vm1538_vm15 = vcmask 195584  }
  0x16   :  { %s3570_s29 = smov 56   ;;  %s3571_s4 = smov 40   ;;  %vm1581_vm2 = vcmask 1042176  }
  0x17   :  { %s3572_s5 = smov 4   ;;  %s3573_s6 = smov 12  }
  0x18   :  { %s3574_s7 = smov 28   ;;  %s3575_s8 = smov 20  }
  0x19   :  { %s3576_s9 = smov 24  }
  0x82   :  { %v222_v15 = vpop.permute.xlu0 %221 }
  0x85   :  { %v3701_v41 = vpop.permute.xlu1 %390 }
  0x86   :  { %v226_v26 = vpop.permute.xlu0 %225 }
  0xd1   :  { %v3609_v4 = vpop.f32.mrf.mxu1 }
  0xd2   :  { %v140_v5 = vsub.f32 %v26_v1, %v3609_v4 }
  0xd3   :  { %v3139_v6 = vpop.f32.mrf.mxu1 }
  0xd4   :  { %v141_v7 = vmul.f32 %v140_v5, %v140_v5 }
  0xd6   :  { %3141 = vmatpush3.msra.mxu1 %v141_v7 }
  0xd7   :  { %3143 = vmatmul.mubr.msk.f32.vlgmr.msra.gmra.mxu1 %vm66_vm1, %v29_v2  ;;  %3150 = vmatprep.subr.mxu1 %v3555_v0 }
  0xd8   :  { %3156 = vmatprep.mubr.msk.f32.mxu1 %vm3556_vm0, %v3555_v0  ;;  %3151 = vmatpush3.msk.msra.mxu1 %vm315_vm4, %v3623_v18 }
  0xd9   :  { %3152 = vmatprep.subr.mxu1 %v3555_v0 }
  0xda   :  { %3153 = vmatpush3.msra.mxu1 %v3629_v19 }
  0xdb   :  { %3154 = vmatprep.subr.mxu1 %v3555_v0 }
  0xdc   :  { %3155 = vmatpush3.msra.mxu1 %v3633_v20 }
  0xdd   :  { %3182 = vmatprep.subr.mxu1 %v3555_v0 }
 0x197   :  { %v208_v9 = vpop.f32.mrf.mxu1 }
 0x198   :  { %v209_v10 = vadd.f32 1e-05, %v208_v9 }
 0x199   :  { %v3144_v11 = vpop.f32.mrf.mxu1 }
 0x19a   :  { %3527 = vrsqrt.f32 %v209_v10 }
 0x1a7   :  { %v3528_v12 = vpop.eup %3527 }
 0x1a8   :  { %v3618_v13 = vmul.f32 %v3528_v12, %v209_v10  ;;  %v214_v14 = vmul.f32 %v3528_v12, %v140_v5 }
 0x1aa   :  { %v219_v16 = vmul.f32 %v2877_v3, %v214_v14 }
 0x1ac   :  { %v224_v17 = vadd.f32 %v222_v15, %v219_v16 }
 0x1ae   :  { %3148 = vmatmul.mubr.msk.f32.vlgmr.msra.gmra.mxu0 %vm228_vm3, %v224_v17 }
 0x1af   :  { %3179 = vmatprep.mubr.msk.f32.mxu0 %vm3556_vm0, %v3555_v0  ;;  %3160 = vmatpush3.msra.mxu0 %v3637_v21 }
 0x1b0   :  { %3161 = vmatprep.subr.mxu0 %v3555_v0 }
 0x1b1   :  { %3162 = vmatpush3.msra.mxu0 %v3639_v22 }
 0x1b2   :  { %3163 = vmatprep.subr.mxu0 %v3555_v0 }
 0x1b3   :  { %3164 = vmatpush3.msra.mxu0 %v3643_v23 }
 0x1b4   :  { %3165 = vmatprep.subr.mxu0 %v3555_v0 }
 0x1b5   :  { %3166 = vmatpush3.msra.mxu0 %v3647_v24 }
 0x1b6   :  { %3167 = vmatprep.subr.mxu0 %v3555_v0 }
 0x1b7   :  { %3168 = vmatpush3.msra.mxu0 %v3651_v25 }
 0x1b8   :  { %3169 = vmatprep.subr.mxu0 %v3555_v0 }
 0x1b9   :  { %3170 = vmatpush3.msra.mxu0 %v3655_v27 }
 0x1ba   :  { %3171 = vmatprep.subr.mxu0 %v3555_v0 }
 0x1bb   :  { %3172 = vmatpush3.msra.mxu0 %v3659_v30 }
 0x1bc   :  { %3173 = vmatprep.subr.mxu0 %v3555_v0 }
 0x1bd   :  { %3174 = vmatpush3.msra.mxu0 %v3676_v33 }
 0x1be   :  { %3175 = vmatprep.subr.mxu0 %v3555_v0 }
 0x1bf   :  { %3176 = vmatpush3.msra.mxu0 %v3680_v34 }
 0x1c0   :  { %3177 = vmatprep.subr.mxu0 %v3555_v0 }
 0x1c1   :  { %3178 = vmatpush3.msra.mxu0 %v3684_v35 }
 0x1c2   :  { %3214 = vmatprep.subr.mxu0 %v3555_v0 }
 0x26e   :  { %v302_v28 = vpop.f32.mrf.mxu0 }
 0x26f   :  { %v303_v29 = vadd.f32 %v302_v28, %v226_v26  ;;  %v56_v26 = vld [vmem:[#allocation2 + $0xe0] sm:$0xff]  ;;  %v57_v28 = vld [vmem:[#allocation2 + $0xe8] sm:$0xff] }
 0x270   :  { %v3149_v31 = vpop.f32.mrf.mxu0 }
 0x271   :  { %v306_v32 = vmax.f32 %v303_v29, 0.0  ;;  %v3860_v29 = vpack.c.bf16 %v57_v28, %v56_v26  ;;  %v52_v31 = vld [vmem:[#allocation2 + $0xc0] sm:$0xff] }
 0x273   :  { %467 = vrot.lane.b32.xlu1 %v306_v32, %s3560_s19  ;;  %3157 = vmatmul.mubr.msk.f32.vlgmr.msra.gmra.mxu1 %vm311_vm5, %v306_v32  ;;  %v53_v32 = vld [vmem:[#allocation2 + $0xc8] sm:$0xff] }
 0x274   :  { %3183 = vmatpush3.msk.msra.mxu1 %vm315_vm4, %v3623_v18  ;;  %3188 = vmatprep.mubr.msk.f32.mxu1 %vm3556_vm0, %v3555_v0 }
 0x275   :  { %3184 = vmatprep.subr.mxu1 %v3555_v0 }
 0x276   :  { %3185 = vmatpush3.msra.mxu1 %v3629_v19 }
 0x277   :  { %3186 = vmatprep.subr.mxu1 %v3555_v0 }
 0x278   :  { %3187 = vmatpush3.msra.mxu1 %v3633_v20 }
 0x279   :  { %3191 = vmatprep.subr.mxu1 %v3555_v0 }
 0x2e5   :  { %v468_v45 = vpop.permute.xlu1 %467 }
 0x333   :  { %v385_v37 = vpop.f32.mrf.mxu1 }
 0x334   :  { %v386_v38 = vadd.f32 %v3688_v36, %v385_v37  ;;  %v3864_v37 = vpack.c.bf16 %v53_v32, %v52_v31 }
 0x335   :  { %v3158_v39 = vpop.f32.mrf.mxu1 }
 0x336   :  { %v389_v40 = vmax.f32 %v386_v38, 0.0 }
 0x338   :  { %3180 = vmatmul.mubr.msk.f32.vlgmr.msra.gmra.mxu0 %vm393_vm6, %v389_v40 }
 0x339   :  { %3215 = vmatpush3.msk.msra.mxu0 %vm315_vm4, %v3623_v18  ;;  %3220 = vmatprep.mubr.msk.f32.mxu0 %vm3556_vm0, %v3555_v0 }
 0x33a   :  { %3216 = vmatprep.subr.mxu0 %v3555_v0 }
 0x33b   :  { %3217 = vmatpush3.msra.mxu0 %v3629_v19 }
 0x33c   :  { %3218 = vmatprep.subr.mxu0 %v3555_v0 }
 0x33d   :  { %3219 = vmatpush3.msra.mxu0 %v3633_v20 }
 0x33e   :  { %3223 = vmatprep.subr.mxu0 %v3555_v0 }
 0x3f8   :  { %v463_v42 = vpop.f32.mrf.mxu0 }
 0x3f9   :  { %v3704_v43 = vadd.f32 %v463_v42, %v3701_v41  ;;  %v58_v42 = vld [vmem:[#allocation2 + $0xf0] sm:$0xff] }
 0x3fa   :  { %v3181_v44 = vpop.f32.mrf.mxu0 }
 0x3fb   :  { %471 = vrot.lane.b32.xlu0 %v3704_v43, %s3561_s20  ;;  %v59_v44 = vld [vmem:[#allocation2 + $0xf8] sm:$0xff] }
 0x46d   :  { %v472_v46 = vpop.permute.xlu0 %471 }
 0x46e   :  { %v475_v47 = vsel %vm474_vm7, %v468_v45, %v472_v46  ;;  %v3872_v45 = vpack.c.bf16 %v59_v44, %v58_v42  ;;  %v54_v46 = vld [vmem:[#allocation2 + $0xd0] sm:$0xff] }
 0x46f   :  { %623 = vrot.lane.b32.xlu1 %v475_v47, %s3560_s19  ;;  %3189 = vmatmul.mubr.msk.f32.vlgmr.msra.gmra.mxu1 %vm311_vm5, %v475_v47  ;;  %v55_v47 = vld [vmem:[#allocation2 + $0xd8] sm:$0xff] }
 0x470   :  { %3192 = vmatpush3.msra.mxu1 %v3637_v21  ;;  %3211 = vmatprep.mubr.msk.f32.mxu1 %vm3556_vm0, %v3555_v0 }
 0x471   :  { %3193 = vmatprep.subr.mxu1 %v3555_v0 }
 0x472   :  { %3194 = vmatpush3.msra.mxu1 %v3639_v22 }
 0x473   :  { %3195 = vmatprep.subr.mxu1 %v3555_v0 }
 0x474   :  { %3196 = vmatpush3.msra.mxu1 %v3643_v23 }
 0x475   :  { %3197 = vmatprep.subr.mxu1 %v3555_v0 }
 0x476   :  { %3198 = vmatpush3.msra.mxu1 %v3647_v24 }
 0x477   :  { %3199 = vmatprep.subr.mxu1 %v3555_v0 }
 0x478   :  { %3200 = vmatpush3.msra.mxu1 %v3651_v25 }
 0x479   :  { %3201 = vmatprep.subr.mxu1 %v3555_v0 }
 0x47a   :  { %3202 = vmatpush3.msra.mxu1 %v3655_v27 }
 0x47b   :  { %3203 = vmatprep.subr.mxu1 %v3555_v0 }
 0x47c   :  { %3204 = vmatpush3.msra.mxu1 %v3659_v30 }
 0x47d   :  { %3205 = vmatprep.subr.mxu1 %v3555_v0 }
 0x47e   :  { %3206 = vmatpush3.msra.mxu1 %v3676_v33 }
 0x47f   :  { %3207 = vmatprep.subr.mxu1 %v3555_v0 }
 0x480   :  { %3208 = vmatpush3.msra.mxu1 %v3680_v34 }
 0x481   :  { %3209 = vmatprep.subr.mxu1 %v3555_v0 }
 0x482   :  { %3210 = vmatpush3.msra.mxu1 %v3684_v35 }
 0x483   :  { %3246 = vmatprep.subr.mxu1 %v3555_v0 }
 0x4e1   :  { %v624_v55 = vpop.permute.xlu1 %623 }
 0x52f   :  { %v545_v48 = vpop.f32.mrf.mxu1 }
 0x530   :  { %v546_v49 = vadd.f32 %v3688_v36, %v545_v48  ;;  %v3876_v48 = vpack.c.bf16 %v55_v47, %v54_v46 }
 0x531   :  { %v3190_v50 = vpop.f32.mrf.mxu1 }
 0x532   :  { %v549_v51 = vmax.f32 %v546_v49, 0.0  ;;  %v50_v49 = vld [vmem:[#allocation2 + $0xb0] sm:$0xff]  ;;  %v51_v50 = vld [vmem:[#allocation2 + $0xb8] sm:$0xff] }
 0x534   :  { %3212 = vmatmul.mubr.msk.f32.vlgmr.msra.gmra.mxu1 %vm393_vm6, %v549_v51  ;;  %v3880_v51 = vpack.c.bf16 %v51_v50, %v50_v49 }
 0x535   :  { %3247 = vmatpush3.msk.msra.mxu1 %vm315_vm4, %v3623_v18  ;;  %3252 = vmatprep.mubr.msk.f32.mxu1 %vm3556_vm0, %v3555_v0 }
 0x536   :  { %3248 = vmatprep.subr.mxu1 %v3555_v0 }
 0x537   :  { %3249 = vmatpush3.msra.mxu1 %v3629_v19 }
 0x538   :  { %3250 = vmatprep.subr.mxu1 %v3555_v0 }
 0x539   :  { %3251 = vmatpush3.msra.mxu1 %v3633_v20 }
 0x53a   :  { %3255 = vmatprep.subr.mxu1 %v3555_v0 }
 0x5f4   :  { %v619_v52 = vpop.f32.mrf.mxu1 }
 0x5f5   :  { %v3745_v53 = vadd.f32 %v619_v52, %v3701_v41 }
 0x5f6   :  { %v3213_v54 = vpop.f32.mrf.mxu1 }
 0x5f7   :  { %627 = vrot.lane.b32.xlu0 %v3745_v53, %s3561_s20 }
 0x669   :  { %v628_v56 = vpop.permute.xlu0 %627 }
 0x66a   :  { %v630_v57 = vsel %vm474_vm7, %v624_v55, %v628_v56 }
 0x66b   :  { %778 = vrot.lane.b32.xlu1 %v630_v57, %s3560_s19  ;;  %3221 = vmatmul.mubr.msk.f32.vlgmr.msra.gmra.mxu0 %vm311_vm5, %v630_v57 }
 0x66c   :  { %3224 = vmatpush3.msra.mxu0 %v3637_v21  ;;  %3243 = vmatprep.mubr.msk.f32.mxu0 %vm3556_vm0, %v3555_v0 }
 0x66d   :  { %3225 = vmatprep.subr.mxu0 %v3555_v0 }
 0x66e   :  { %3226 = vmatpush3.msra.mxu0 %v3639_v22 }
 0x66f   :  { %3227 = vmatprep.subr.mxu0 %v3555_v0 }
 0x670   :  { %3228 = vmatpush3.msra.mxu0 %v3643_v23 }
 0x671   :  { %3229 = vmatprep.subr.mxu0 %v3555_v0 }
 0x672   :  { %3230 = vmatpush3.msra.mxu0 %v3647_v24 }
 0x673   :  { %3231 = vmatprep.subr.mxu0 %v3555_v0 }
 0x674   :  { %3232 = vmatpush3.msra.mxu0 %v3651_v25 }
 0x675   :  { %3233 = vmatprep.subr.mxu0 %v3555_v0 }
 0x676   :  { %3234 = vmatpush3.msra.mxu0 %v3655_v27 }
 0x677   :  { %3235 = vmatprep.subr.mxu0 %v3555_v0 }
 0x678   :  { %3236 = vmatpush3.msra.mxu0 %v3659_v30 }
 0x679   :  { %3237 = vmatprep.subr.mxu0 %v3555_v0 }
 0x67a   :  { %3238 = vmatpush3.msra.mxu0 %v3676_v33 }
 0x67b   :  { %3239 = vmatprep.subr.mxu0 %v3555_v0 }
 0x67c   :  { %3240 = vmatpush3.msra.mxu0 %v3680_v34 }
 0x67d   :  { %3241 = vmatprep.subr.mxu0 %v3555_v0 }
 0x67e   :  { %3242 = vmatpush3.msra.mxu0 %v3684_v35 }
 0x67f   :  { %3278 = vmatprep.subr.mxu0 %v3555_v0 }
 0x6dd   :  { %v779_v2 = vpop.permute.xlu1 %778 }
 0x72b   :  { %v700_v58 = vpop.f32.mrf.mxu0 }
 0x72c   :  { %v701_v59 = vadd.f32 %v3688_v36, %v700_v58 }
 0x72d   :  { %v3222_v60 = vpop.f32.mrf.mxu0 }
 0x72e   :  { %v704_v61 = vmax.f32 %v701_v59, 0.0 }
 0x730   :  { %3244 = vmatmul.mubr.msk.f32.vlgmr.msra.gmra.mxu0 %vm393_vm6, %v704_v61 }
 0x731   :  { %3279 = vmatpush3.msk.msra.mxu0 %vm315_vm4, %v3623_v18  ;;  %3284 = vmatprep.mubr.msk.f32.mxu0 %vm3556_vm0, %v3555_v0 }
 0x732   :  { %3280 = vmatprep.subr.mxu0 %v3555_v0 }
 0x733   :  { %3281 = vmatpush3.msra.mxu0 %v3629_v19 }
 0x734   :  { %3282 = vmatprep.subr.mxu0 %v3555_v0 }
 0x735   :  { %3283 = vmatpush3.msra.mxu0 %v3633_v20 }
 0x736   :  { %3287 = vmatprep.subr.mxu0 %v3555_v0 }
 0x7f0   :  { %v774_v62 = vpop.f32.mrf.mxu0 }
 0x7f1   :  { %v3786_v63 = vadd.f32 %v774_v62, %v3701_v41 }
 0x7f2   :  { %v3245_v1 = vpop.f32.mrf.mxu0 }
 0x7f3   :  { %782 = vrot.lane.b32.xlu0 %v3786_v63, %s3561_s20 }
 0x865   :  { %v783_v3 = vpop.permute.xlu0 %782 }
 0x866   :  { %v785_v5 = vsel %vm474_vm7, %v779_v2, %v783_v3 }
 0x867   :  { %933 = vrot.lane.b32.xlu1 %v785_v5, %s3560_s19  ;;  %3253 = vmatmul.mubr.msk.f32.vlgmr.msra.gmra.mxu1 %vm311_vm5, %v785_v5  ;;  %v4001_v5 = vld [vmem:[#allocation2 + $0x90] sm:$0xff] }
 0x868   :  { %3256 = vmatpush3.msra.mxu1 %v3637_v21  ;;  %3275 = vmatprep.mubr.msk.f32.mxu1 %vm3556_vm0, %v3555_v0 }
 0x869   :  { %3257 = vmatprep.subr.mxu1 %v3555_v0 }
 0x86a   :  { %3258 = vmatpush3.msra.mxu1 %v3639_v22 }
 0x86b   :  { %3259 = vmatprep.subr.mxu1 %v3555_v0 }
 0x86c   :  { %3260 = vmatpush3.msra.mxu1 %v3643_v23 }
 0x86d   :  { %3261 = vmatprep.subr.mxu1 %v3555_v0 }
 0x86e   :  { %3262 = vmatpush3.msra.mxu1 %v3647_v24 }
 0x86f   :  { %3263 = vmatprep.subr.mxu1 %v3555_v0 }
 0x870   :  { %3264 = vmatpush3.msra.mxu1 %v3651_v25 }
 0x871   :  { %3265 = vmatprep.subr.mxu1 %v3555_v0 }
 0x872   :  { %3266 = vmatpush3.msra.mxu1 %v3655_v27 }
 0x873   :  { %3267 = vmatprep.subr.mxu1 %v3555_v0 }
 0x874   :  { %3268 = vmatpush3.msra.mxu1 %v3659_v30 }
 0x875   :  { %3269 = vmatprep.subr.mxu1 %v3555_v0 }
 0x876   :  { %3270 = vmatpush3.msra.mxu1 %v3676_v33 }
 0x877   :  { %3271 = vmatprep.subr.mxu1 %v3555_v0 }
 0x878   :  { %3272 = vmatpush3.msra.mxu1 %v3680_v34 }
 0x879   :  { %3273 = vmatprep.subr.mxu1 %v3555_v0 }
 0x87a   :  { %3274 = vmatpush3.msra.mxu1 %v3684_v35 }
 0x87b   :  { %3310 = vmatprep.subr.mxu1 %v3555_v0 }
 0x8d9   :  { %v934_v14 = vpop.permute.xlu1 %933 }
 0x927   :  { %v855_v6 = vpop.f32.mrf.mxu1 }
 0x928   :  { %v856_v7 = vadd.f32 %v3688_v36, %v855_v6 }
 0x929   :  { %v3254_v8 = vpop.f32.mrf.mxu1 }
 0x92a   :  { %v859_v9 = vmax.f32 %v856_v7, 0.0 }
 0x92c   :  { %3276 = vmatmul.mubr.msk.f32.vlgmr.msra.gmra.mxu1 %vm393_vm6, %v859_v9 }
 0x92d   :  { %3311 = vmatpush3.msk.msra.mxu1 %vm315_vm4, %v3623_v18  ;;  %3316 = vmatprep.mubr.msk.f32.mxu1 %vm3556_vm0, %v3555_v0 }
 0x92e   :  { %3312 = vmatprep.subr.mxu1 %v3555_v0 }
 0x92f   :  { %3313 = vmatpush3.msra.mxu1 %v3629_v19 }
 0x930   :  { %3314 = vmatprep.subr.mxu1 %v3555_v0 }
 0x931   :  { %3315 = vmatpush3.msra.mxu1 %v3633_v20 }
 0x932   :  { %3319 = vmatprep.subr.mxu1 %v3555_v0 }
 0x9ec   :  { %v929_v10 = vpop.f32.mrf.mxu1 }
 0x9ed   :  { %v930_v11 = vadd.f32 %v929_v10, %v3701_v41 }
 0x9ee   :  { %v3277_v12 = vpop.f32.mrf.mxu1 }
 0x9ef   :  { %937 = vrot.lane.b32.xlu0 %v930_v11, %s3561_s20 }
 0xa61   :  { %v938_v15 = vpop.permute.xlu0 %937 }
 0xa62   :  { %v940_v16 = vsel %vm474_vm7, %v934_v14, %v938_v15 }
 0xa63   :  { %1088 = vrot.lane.b32.xlu1 %v940_v16, %s3560_s19  ;;  %3285 = vmatmul.mubr.msk.f32.vlgmr.msra.gmra.mxu0 %vm311_vm5, %v940_v16 }
 0xa64   :  { %3288 = vmatpush3.msra.mxu0 %v3637_v21  ;;  %3307 = vmatprep.mubr.msk.f32.mxu0 %vm3556_vm0, %v3555_v0 }
 0xa65   :  { %3289 = vmatprep.subr.mxu0 %v3555_v0 }
 0xa66   :  { %3290 = vmatpush3.msra.mxu0 %v3639_v22 }
 0xa67   :  { %1243 = vrot.lane.b32.xlu1 %v3745_v53, %s3562_s21  ;;  %3291 = vmatprep.subr.mxu0 %v3555_v0 }
 0xa68   :  { %3292 = vmatpush3.msra.mxu0 %v3643_v23 }
 0xa69   :  { %3293 = vmatprep.subr.mxu0 %v3555_v0 }
 0xa6a   :  { %3294 = vmatpush3.msra.mxu0 %v3647_v24 }
 0xa6b   :  { %1249 = vrot.lane.b32.xlu1 %v930_v11, %s3563_s22  ;;  %3295 = vmatprep.subr.mxu0 %v3555_v0 }
 0xa6c   :  { %3296 = vmatpush3.msra.mxu0 %v3651_v25 }
 0xa6d   :  { %3297 = vmatprep.subr.mxu0 %v3555_v0 }
 0xa6e   :  { %3298 = vmatpush3.msra.mxu0 %v3655_v27 }
 0xa6f   :  { %3299 = vmatprep.subr.mxu0 %v3555_v0  ;;  %1287 = vrot.lane.b32.xlu1 %v3860_v29, %s3559_s18 }
 0xa70   :  { %3300 = vmatpush3.msra.mxu0 %v3659_v30 }
 0xa71   :  { %3301 = vmatprep.subr.mxu0 %v3555_v0 }
 0xa72   :  { %3302 = vmatpush3.msra.mxu0 %v3676_v33 }
 0xa73   :  { %3303 = vmatprep.subr.mxu0 %v3555_v0  ;;  %1283 = vrot.lane.b32.xlu1 %v3864_v37, %s3559_s18 }
 0xa74   :  { %3304 = vmatpush3.msra.mxu0 %v3680_v34 }
 0xa75   :  { %3305 = vmatprep.subr.mxu0 %v3555_v0 }
 0xa76   :  { %3306 = vmatpush3.msra.mxu0 %v3684_v35 }
 0xa77   :  { %3342 = vmatprep.subr.bf16.mxu0 %v3555_v0 }
 0xad5   :  { %v1089_v52 = vpop.permute.xlu1 %1088 }
 0xad9   :  { %v1244_v54 = vpop.permute.xlu1 %1243 }
 0xada   :  { %v1260_v56 = vsel %vm1259_vm8, %v3704_v43, %v1244_v54 }
 0xb23   :  { %v1010_v17 = vpop.f32.mrf.mxu0 }
 0xb24   :  { %v1011_v18 = vadd.f32 %v3688_v36, %v1010_v17 }
 0xb25   :  { %v3286_v19 = vpop.f32.mrf.mxu0 }
 0xb26   :  { %v1014_v20 = vmax.f32 %v1011_v18, 0.0 }
 0xb28   :  { %3308 = vmatmul.mubr.msk.f32.vlgmr.msra.gmra.mxu0 %vm393_vm6, %v1014_v20 }
 0xb29   :  { %3354 = vmatprep.mubr.msk.bf16.mxu0 %vm3556_vm0, %v3555_v0 }
 0xbe8   :  { %v1084_v38 = vpop.f32.mrf.mxu0 }
 0xbe9   :  { %v1085_v39 = vadd.f32 %v1084_v38, %v3701_v41 }
 0xbea   :  { %v3309_v40 = vpop.f32.mrf.mxu0 }
 0xbeb   :  { %1092 = vrot.lane.b32.xlu0 %v1085_v39, %s3561_s20 }
 0xbef   :  { %1246 = vrot.lane.b32.xlu0 %v3786_v63, %s3564_s23 }
 0xbf3   :  { %1289 = vrot.lane.b32.xlu0 %v3872_v45, %s3559_s18 }
 0xbf7   :  { %1285 = vrot.lane.b32.xlu0 %v3876_v48, %s3559_s18 }
 0xbfb   :  { %1281 = vrot.lane.b32.xlu0 %v3880_v51, %s3559_s18 }
 0xbff   :  { %1394 = vrot.lane.b32.xlu0 %v3872_v45, %s3565_s24 }
 0xc03   :  { %1392 = vrot.lane.b32.xlu0 %v3860_v29, %s3565_s24 }
 0xc07   :  { %1390 = vrot.lane.b32.xlu0 %v3876_v48, %s3565_s24 }
 0xc0b   :  { %1388 = vrot.lane.b32.xlu0 %v3864_v37, %s3565_s24 }
 0xc0f   :  { %1386 = vrot.lane.b32.xlu0 %v3880_v51, %s3565_s24 }
 0xc13   :  { %1252 = vrot.lane.b32.xlu0 %v1085_v39, %s3565_s24 }
 0xc5d   :  { %v1093_v53 = vpop.permute.xlu0 %1092 }
 0xc5e   :  { %v1095_v55 = vsel %vm474_vm7, %v1089_v52, %v1093_v53  ;;  %v3529_v52 = vld [vmem:[#allocation2] ss:$0 sm:$0xff] }
 0xc5f   :  { %3317 = vmatmul.mubr.msk.f32.vlgmr.msra.gmra.mxu1 %vm311_vm5, %v1095_v55 }
 0xc60   :  { %3320 = vmatpush3.msra.mxu1 %v3637_v21  ;;  %3339 = vmatprep.mubr.msk.f32.mxu1 %vm3556_vm0, %v3555_v0  ;;  %v48_v21 = vld [vmem:[#allocation2 + $0xa0] sm:$0xff] }
 0xc61   :  { %v1247_v57 = vpop.permute.xlu0 %1246  ;;  %3321 = vmatprep.subr.mxu1 %v3555_v0 }
 0xc62   :  { %v3903_v58 = vsel %vm1261_vm9, %v1260_v56, %v1247_v57  ;;  %3322 = vmatpush3.msra.mxu1 %v3639_v22  ;;  %v49_v22 = vld [vmem:[#allocation2 + $0xa8] sm:$0xff] }
 0xc63   :  { %3323 = vmatprep.subr.mxu1 %v3555_v0 }
 0xc64   :  { %3324 = vmatpush3.msra.mxu1 %v3643_v23  ;;  %v3924_v23 = vpack.c.bf16 %v49_v22, %v48_v21 }
 0xc65   :  { %v1290_v59 = vpop.permute.xlu0 %1289  ;;  %3325 = vmatprep.subr.mxu1 %v3555_v0 }
 0xc66   :  { %3326 = vmatpush3.msra.mxu1 %v3647_v24  ;;  %3343 = vmatpush3.bf16.msra.mxu0 %v1290_v59 }
 0xc67   :  { %3327 = vmatprep.subr.mxu1 %v3555_v0  ;;  %3344 = vmatprep.subr.bf16.mxu0 %v3555_v0 }
 0xc68   :  { %3328 = vmatpush3.msra.mxu1 %v3651_v25  ;;  %1279 = vrot.lane.b32.xlu1 %v3924_v23, %s3559_s18 }
 0xc69   :  { %3329 = vmatprep.subr.mxu1 %v3555_v0  ;;  %1384 = vrot.lane.b32.xlu0 %v3924_v23, %s3565_s24  ;;  %v1286_v60 = vpop.permute.xlu0 %1285 }
 0xc6a   :  { %3330 = vmatpush3.msra.mxu1 %v3655_v27 }
 0xc6b   :  { %3331 = vmatprep.subr.mxu1 %v3555_v0 }
 0xc6c   :  { %3332 = vmatpush3.msra.mxu1 %v3659_v30  ;;  %1457 = vrot.lane.b32.xlu1 %v3872_v45, %s3564_s23 }
 0xc6d   :  { %3333 = vmatprep.subr.mxu1 %v3555_v0  ;;  %v1282_v62 = vpop.permute.xlu0 %1281 }
 0xc6e   :  { %3334 = vmatpush3.msra.mxu1 %v3676_v33  ;;  %v3956_v33 = vld [vmem:[#allocation2 + $0x88] sm:$0xff] }
 0xc6f   :  { %3335 = vmatprep.subr.mxu1 %v3555_v0  ;;  %1589 = vrot.lane.b32.xlu0 %v3956_v33, %s3558_s0 }
 0xc70   :  { %3336 = vmatpush3.msra.mxu1 %v3680_v34  ;;  %1455 = vrot.lane.b32.xlu1 %v3860_v29, %s3564_s23  ;;  %v3960_v34 = vld [vmem:[#allocation2 + $0x98] sm:$0x3f] }
 0xc71   :  { %3337 = vmatprep.subr.mxu1 %v3555_v0 }
 0xc72   :  { %3338 = vmatpush3.msra.mxu1 %v3684_v35  ;;  %v3964_v35 = vpop.permute.xlu1 %1249 }
 0xc73   :  { %3358 = vmatprep.subr.bf16.mxu1 %v3555_v0  ;;  %1593 = vrot.lane.b32.xlu0 %v3960_v34, %s3558_s0  ;;  %v1264_v17 = vsel %vm1263_vm10, %v3903_v58, %v3964_v35 }
 0xc74   :  { %1453 = vrot.lane.b32.xlu1 %v3876_v48, %s3564_s23 }
 0xc76   :  { %v1288_v43 = vpop.permute.xlu1 %1287 }
 0xc77   :  { %3345 = vmatpush3.bf16.msra.mxu0 %v1288_v43 }
 0xc78   :  { %1451 = vrot.lane.b32.xlu1 %v3864_v37, %s3564_s23  ;;  %3346 = vmatprep.subr.bf16.mxu0 %v3555_v0 }
 0xc7a   :  { %v1284_v61 = vpop.permute.xlu1 %1283 }
 0xc7b   :  { %3347 = vmatpush3.bf16.msra.mxu0 %v1286_v60 }
 0xc7c   :  { %1449 = vrot.lane.b32.xlu1 %v3880_v51, %s3564_s23  ;;  %3348 = vmatprep.subr.bf16.mxu0 %v3555_v0 }
 0xc7f   :  { %3349 = vmatpush3.bf16.msra.mxu0 %v1284_v61 }
 0xc80   :  { %3350 = vmatprep.subr.bf16.mxu0 %v3555_v0 }
 0xc83   :  { %3351 = vmatpush3.bf16.msra.mxu0 %v1282_v62 }
 0xc84   :  { %3352 = vmatprep.subr.bf16.mxu0 %v3555_v0 }
 0xcda   :  { %v1280_v63 = vpop.permute.xlu1 %1279 }
 0xcdb   :  { %3353 = vmatpush3.bf16.msra.mxu0 %v1280_v63 }
 0xcdc   :  { %3374 = vmatprep.subr.bf16.mxu0 %v3555_v0 }
 0xcde   :  { %v1458_v6 = vpop.permute.xlu1 %1457 }
 0xce2   :  { %v1456_v8 = vpop.permute.xlu1 %1455 }
 0xce6   :  { %v1454_v10 = vpop.permute.xlu1 %1453 }
 0xcea   :  { %v1452_v12 = vpop.permute.xlu1 %1451 }
 0xcee   :  { %v1450_v15 = vpop.permute.xlu1 %1449 }
 0xd1f   :  { %v1165_v24 = vpop.f32.mrf.mxu1 }
 0xd20   :  { %v1166_v25 = vadd.f32 %v3688_v36, %v1165_v24  ;;  %v3966_v36 = vld [vmem:[#allocation2 + $0x80] sm:$0xff] }
 0xd21   :  { %v3318_v27 = vpop.f32.mrf.mxu1  ;;  %1785 = vrot.lane.b32.xlu0 %v3966_v36, %s3560_s19 }
 0xd22   :  { %v1169_v30 = vmax.f32 %v1166_v25, 0.0 }
 0xd24   :  { %3340 = vmatmul.mubr.msk.f32.vlgmr.msra.gmra.mxu1 %vm393_vm6, %v1169_v30 }
 0xd25   :  { %3359 = vmatpush3.bf16.msra.mxu1 %v3872_v45  ;;  %3370 = vmatprep.mubr.msk.bf16.mxu1 %vm3556_vm0, %v3555_v0 }
 0xd26   :  { %3360 = vmatprep.subr.bf16.mxu1 %v3555_v0  ;;  %1895 = vrot.lane.b32.xlu0 %v3956_v33, %s3566_s25 }
 0xd29   :  { %3361 = vmatpush3.bf16.msra.mxu1 %v3860_v29 }
 0xd2a   :  { %3362 = vmatprep.subr.bf16.mxu1 %v3555_v0  ;;  %1791 = vrot.lane.b32.xlu0 %v3960_v34, %s3560_s19 }
 0xd2d   :  { %3363 = vmatpush3.bf16.msra.mxu1 %v3876_v48 }
 0xd2e   :  { %3364 = vmatprep.subr.bf16.mxu1 %v3555_v0  ;;  %1899 = vrot.lane.b32.xlu0 %v3960_v34, %s3566_s25 }
 0xd31   :  { %3365 = vmatpush3.bf16.msra.mxu1 %v3864_v37 }
 0xd32   :  { %3366 = vmatprep.subr.bf16.mxu1 %v3555_v0  ;;  %2001 = vrot.lane.b32.xlu0 %v3966_v36, %s3559_s18 }
 0xd35   :  { %3367 = vmatpush3.bf16.msra.mxu1 %v3880_v51 }
 0xd36   :  { %3368 = vmatprep.subr.bf16.mxu1 %v3555_v0  ;;  %2111 = vrot.lane.b32.xlu0 %v3956_v33, %s3567_s26 }
 0xd39   :  { %3369 = vmatpush3.bf16.msra.mxu1 %v3924_v23 }
 0xd3a   :  { %3390 = vmatprep.subr.bf16.mxu1 %v3555_v0  ;;  %2007 = vrot.lane.b32.xlu0 %v3960_v34, %s3559_s18 }
 0xd3e   :  { %2115 = vrot.lane.b32.xlu0 %v3960_v34, %s3567_s26 }
 0xd42   :  { %2217 = vrot.lane.b32.xlu0 %v3966_v36, %s3568_s27 }
 0xd46   :  { %2327 = vrot.lane.b32.xlu0 %v3956_v33, %s3569_s28 }
 0xd4a   :  { %2223 = vrot.lane.b32.xlu0 %v3960_v34, %s3568_s27 }
 0xde4   :  { %v1239_v1 = vpop.f32.mrf.mxu1 }
 0xde5   :  { %v1240_v2 = vadd.f32 %v1239_v1, %v3701_v41  ;;  %v1395_v41 = vpop.permute.xlu0 %1394 }
 0xde6   :  { %v3341_v3 = vpop.f32.mrf.mxu1 }
 0xde7   :  { %1256 = vrot.lane.b32.xlu1 %v1240_v2, %s3568_s27 }
 0xde9   :  { %v1393_v7 = vpop.permute.xlu0 %1392 }
 0xdeb   :  { %1447 = vrot.lane.b32.xlu1 %v3924_v23, %s3564_s23 }
 0xded   :  { %v1391_v9 = vpop.permute.xlu0 %1390 }
 0xdef   :  { %1587 = vrot.lane.b32.xlu1 %v3966_v36, %s3558_s0 }
 0xdf1   :  { %v1389_v11 = vpop.permute.xlu0 %1388 }
 0xdf3   :  { %1591 = vrot.lane.b32.xlu1 %v4001_v5, %s3558_s0 }
 0xdf5   :  { %v1387_v14 = vpop.permute.xlu0 %1386 }
 0xdf7   :  { %1787 = vrot.lane.b32.xlu1 %v3956_v33, %s3560_s19 }
 0xdf9   :  { %v1253_v16 = vpop.permute.xlu0 %1252 }
 0xdfa   :  { %v1266_v18 = vsel %vm1265_vm11, %v1264_v17, %v1253_v16 }
 0xdfb   :  { %1893 = vrot.lane.b32.xlu1 %v3966_v36, %s3566_s25 }
 0xdfd   :  { %v1385_v29 = vpop.permute.xlu0 %1384 }
 0xdff   :  { %1789 = vrot.lane.b32.xlu1 %v4001_v5, %s3560_s19 }
 0xe01   :  { %v4071_v31 = vpop.permute.xlu0 %1589 }
 0xe03   :  { %1897 = vrot.lane.b32.xlu1 %v4001_v5, %s3566_s25 }
 0xe05   :  { %v4080_v38 = vpop.permute.xlu0 %1593 }
 0xe07   :  { %2003 = vrot.lane.b32.xlu1 %v3956_v33, %s3559_s18 }
 0xe09   :  { %v1786_v42 = vpop.permute.xlu0 %1785 }
 0xe0b   :  { %2109 = vrot.lane.b32.xlu1 %v3966_v36, %s3567_s26 }
 0xe0d   :  { %v4127_v48 = vpop.permute.xlu0 %1895 }
 0xe0f   :  { %2005 = vrot.lane.b32.xlu1 %v4001_v5, %s3559_s18 }
 0xe11   :  { %v1792_v50 = vpop.permute.xlu0 %1791 }
 0xe13   :  { %2113 = vrot.lane.b32.xlu1 %v4001_v5, %s3567_s26 }
 0xe15   :  { %v4139_v53 = vpop.permute.xlu0 %1899 }
 0xe17   :  { %2219 = vrot.lane.b32.xlu1 %v3956_v33, %s3568_s27 }
 0xe19   :  { %v2002_v55 = vpop.permute.xlu0 %2001 }
 0xe1b   :  { %2325 = vrot.lane.b32.xlu1 %v3966_v36, %s3569_s28 }
 0xe1d   :  { %v4149_v57 = vpop.permute.xlu0 %2111 }
 0xe1f   :  { %2221 = vrot.lane.b32.xlu1 %v4001_v5, %s3568_s27 }
 0xe21   :  { %v2008_v59 = vpop.permute.xlu0 %2007 }
 0xe23   :  { %2329 = vrot.lane.b32.xlu1 %v4001_v5, %s3569_s28 }
 0xe25   :  { %v4155_v22 = vpop.permute.xlu0 %2115 }
 0xe27   :  { %2435 = vrot.lane.b32.xlu1 %v3956_v33, %s3565_s24 }
 0xe29   :  { %v2218_v24 = vpop.permute.xlu0 %2217 }
 0xe2b   :  { %2541 = vrot.lane.b32.xlu1 %v3966_v36, %s3570_s29 }
 0xe2d   :  { %v4159_v27 = vpop.permute.xlu0 %2327 }
 0xe31   :  { %v2224_v35 = vpop.permute.xlu0 %2223 }
 0xe59   :  { %v1257_v19 = vpop.permute.xlu1 %1256 }
 0xe5a   :  { %v4036_v20 = vsel %vm393_vm6, %v1266_v18, %v1257_v19 }
 0xe5b   :  { %1793 = vrot.lane.b32.xlu1 %v4036_v20, %s3560_s19  ;;  %1596 = vrot.lane.b32.xlu0 %v4036_v20, %s3558_s0  ;;  %v1270_v26 = vpack.c.bf16 %v4036_v20, %v4036_v20  ;;  %1269 = vst.msk [vmem:[%s4267_s2] sm:$0xff] %vm1268_vm12, %v4036_v20 }
 0xe5d   :  { %3371 = vmatmul.mubr.msk.bf16.vlgmr.msra.gmra.mxu1 %vm1268_vm12, %v1270_v26  ;;  %v1272_v28 = vrot.slane %v1270_v26, 1  ;;  %v1448_v32 = vpop.permute.xlu1 %1447  ;;  %v1446_v39 = vrot.slane %v1270_v26, 3  ;;  %v1383_v44 = vrot.slane %v1270_v26, 2 }
 0xe5e   :  { %3391 = vmatpush3.bf16.msra.mxu1 %v1458_v6  ;;  %3402 = vmatprep.mubr.msk.bf16.mxu1 %vm3556_vm0, %v3555_v0 }
 0xe5f   :  { %2437 = vrot.lane.b32.xlu1 %v4001_v5, %s3565_s24  ;;  %2331 = vrot.lane.b32.xlu0 %v3960_v34, %s3569_s28 }
 0xe60   :  { %3355 = vmatmul.mubr.msk.bf16.vlgmr.msra.gmra.mxu0 %vm1268_vm12, %v1272_v28  ;;  %3392 = vmatprep.subr.bf16.mxu1 %v3555_v0 }
 0xe61   :  { %3375 = vmatpush3.bf16.msra.mxu0 %v1395_v41  ;;  %3386 = vmatprep.mubr.msk.bf16.mxu0 %vm3556_vm0, %v3555_v0  ;;  %v1588_v37 = vpop.permute.xlu1 %1587  ;;  %vm1540_vm0 = vcmask 228352  }
 0xe62   :  { %3393 = vmatpush3.bf16.msra.mxu1 %v1456_v8  ;;  %3376 = vmatprep.subr.bf16.mxu0 %v3555_v0 }
 0xe63   :  { %2009 = vrot.lane.b32.xlu1 %v4036_v20, %s3559_s18  ;;  %2433 = vrot.lane.b32.xlu0 %v3966_v36, %s3565_s24 }
 0xe64   :  { %3394 = vmatprep.subr.bf16.mxu1 %v3555_v0 }
 0xe65   :  { %3377 = vmatpush3.bf16.msra.mxu0 %v1393_v7  ;;  %v4093_v40 = vpop.permute.xlu1 %1591 }
 0xe66   :  { %3395 = vmatpush3.bf16.msra.mxu1 %v1454_v10  ;;  %3378 = vmatprep.subr.bf16.mxu0 %v3555_v0 }
 0xe67   :  { %2545 = vrot.lane.b32.xlu1 %v4001_v5, %s3570_s29  ;;  %2543 = vrot.lane.b32.xlu0 %v3956_v33, %s3570_s29 }
 0xe68   :  { %3396 = vmatprep.subr.bf16.mxu1 %v3555_v0 }
 0xe69   :  { %3379 = vmatpush3.bf16.msra.mxu0 %v1391_v9 }
 0xe6a   :  { %3397 = vmatpush3.bf16.msra.mxu1 %v1452_v12  ;;  %3380 = vmatprep.subr.bf16.mxu0 %v3555_v0 }
 0xe6b   :  { %2225 = vrot.lane.b32.xlu1 %v4036_v20, %s3568_s27  ;;  %1901 = vrot.lane.b32.xlu0 %v4036_v20, %s3566_s25 }
 0xe6c   :  { %3398 = vmatprep.subr.bf16.mxu1 %v3555_v0 }
 0xe6d   :  { %3381 = vmatpush3.bf16.msra.mxu0 %v1389_v11 }
 0xe6e   :  { %3399 = vmatpush3.bf16.msra.mxu1 %v1450_v15  ;;  %3382 = vmatprep.subr.bf16.mxu0 %v3555_v0 }
 0xe6f   :  { %2651 = vrot.lane.b32.xlu1 %v3956_v33, %s3563_s22  ;;  %2439 = vrot.lane.b32.xlu0 %v3960_v34, %s3565_s24 }
 0xe70   :  { %3400 = vmatprep.subr.bf16.mxu1 %v3555_v0 }
 0xe71   :  { %3383 = vmatpush3.bf16.msra.mxu0 %v1387_v14 }
 0xe72   :  { %3401 = vmatpush3.bf16.msra.mxu1 %v1448_v32  ;;  %3384 = vmatprep.subr.bf16.mxu0 %v3555_v0  ;;  %v4101_v0 = vpop.permute.xlu1 %1787 }
 0xe73   :  { %2441 = vrot.lane.b32.xlu1 %v4036_v20, %s3565_s24  ;;  %2117 = vrot.lane.b32.xlu0 %v4036_v20, %s3567_s26 }
 0xe75   :  { %3385 = vmatpush3.bf16.msra.mxu0 %v1385_v29  ;;  %3403 = vmatmul.mubr.msk.bf16.vlgmr.msra.gmra.mxu1 %vm1268_vm12, %v1446_v39 }
 0xe76   :  { %3424 = vmatprep.mubr.msk.f32.mxu1 %vm66_vm1, %v1786_v42  ;;  %v4112_v45 = vpop.permute.xlu1 %1893 }
 0xe77   :  { %2757 = vrot.lane.b32.xlu1 %v3966_v36, %s3571_s4  ;;  %2547 = vrot.lane.b32.xlu0 %v3960_v34, %s3570_s29 }
 0xe78   :  { %3387 = vmatmul.mubr.msk.bf16.vlgmr.msra.gmra.mxu0 %vm1268_vm12, %v1383_v44 }
 0xe79   :  { %3408 = vmatprep.mubr.msk.f32.mxu0 %vm66_vm1, %v1588_v37 }
 0xe7a   :  { %v1790_v46 = vpop.permute.xlu1 %1789 }
 0xe7b   :  { %2657 = vrot.lane.b32.xlu1 %v4036_v20, %s3563_s22  ;;  %2333 = vrot.lane.b32.xlu0 %v4036_v20, %s3569_s28 }
 0xe7e   :  { %v4121_v47 = vpop.permute.xlu1 %1897 }
 0xe7f   :  { %2653 = vrot.lane.b32.xlu1 %v4001_v5, %s3563_s22  ;;  %2649 = vrot.lane.b32.xlu0 %v3966_v36, %s3563_s22 }
 0xe82   :  { %v2004_v49 = vpop.permute.xlu1 %2003 }
 0xe83   :  { %2761 = vrot.lane.b32.xlu1 %v4001_v5, %s3571_s4  ;;  %2549 = vrot.lane.b32.xlu0 %v4036_v20, %s3570_s29 }
 0xe86   :  { %v4135_v51 = vpop.permute.xlu1 %2109 }
 0xe87   :  { %1543 = vrot.lane.b32.xlu1 %v3618_v13, %s3572_s5  ;;  %2759 = vrot.lane.b32.xlu0 %v3956_v33, %s3571_s4 }
 0xe8a   :  { %v2006_v54 = vpop.permute.xlu1 %2005 }
 0xe8b   :  { %1510 = vrot.lane.b32.xlu1 %v3609_v4, %s3572_s5  ;;  %2765 = vrot.lane.b32.xlu0 %v4036_v20, %s3571_s4 }
 0xe8e   :  { %v4146_v56 = vpop.permute.xlu1 %2113 }
 0xe8f   :  { %1513 = vrot.lane.b32.xlu1 %v3609_v4, %s3554_s13  ;;  %2655 = vrot.lane.b32.xlu0 %v3960_v34, %s3563_s22 }
 0xe92   :  { %v2220_v58 = vpop.permute.xlu1 %2219 }
 0xe93   :  { %1516 = vrot.lane.b32.xlu1 %v3609_v4, %s3573_s6  ;;  %2763 = vrot.lane.b32.xlu0 %v3960_v34, %s3571_s4 }
 0xe96   :  { %v4153_v21 = vpop.permute.xlu1 %2325 }
 0xe97   :  { %1519 = vrot.lane.b32.xlu1 %v3609_v4, %s3562_s21  ;;  %1546 = vrot.lane.b32.xlu0 %v3618_v13, %s3554_s13 }
 0xe9a   :  { %v2222_v23 = vpop.permute.xlu1 %2221 }
 0xe9b   :  { %1571 = vrot.lane.b32.xlu1 %v3529_v52, %s3565_s24  ;;  %1549 = vrot.lane.b32.xlu0 %v3618_v13, %s3573_s6 }
 0xe9e   :  { %v4157_v25 = vpop.permute.xlu1 %2329 }
 0xe9f   :  { %1561 = vrot.lane.b32.xlu1 %v3618_v13, %s3574_s7  ;;  %1552 = vrot.lane.b32.xlu0 %v3618_v13, %s3562_s21 }
 0xea2   :  { %v2436_v30 = vpop.permute.xlu1 %2435 }
 0xea3   :  { %1528 = vrot.lane.b32.xlu1 %v3609_v4, %s3574_s7  ;;  %1555 = vrot.lane.b32.xlu0 %v3618_v13, %s3575_s8 }
 0xea6   :  { %v4161_v43 = vpop.permute.xlu1 %2541 }
 0xea7   :  { %1558 = vrot.lane.b32.xlu0 %v3618_v13, %s3576_s9 }
 0xeab   :  { %1522 = vrot.lane.b32.xlu0 %v3609_v4, %s3575_s8 }
 0xeaf   :  { %1525 = vrot.lane.b32.xlu0 %v3609_v4, %s3576_s9 }
 0xecd   :  { %v1597_v60 = vpop.permute.xlu0 %1596  ;;  %v1794_v61 = vpop.permute.xlu1 %1793 }
 0xece   :  { %3406 = vmatprep.subr.mxu0 %v1597_v60  ;;  %3422 = vmatprep.subr.mxu1 %v1794_v61 }
 0xecf   :  { %3407 = vmatpush3.msra.mxu0 %v1597_v60  ;;  %3423 = vmatpush3.msra.mxu1 %v1794_v61 }
 0xed0   :  { %3409 = vmatmul.mubr.msk.f32.vlgmr.msra.gmra.mxu0 %vm66_vm1, %v4071_v31  ;;  %3414 = vmatprep.subr.mxu0 %v4036_v20 }
 0xed1   :  { %3425 = vmatmul.mubr.msk.f32.vlgmr.msra.gmra.mxu1 %vm66_vm1, %v4101_v0  ;;  %v4168_v62 = vpop.permute.xlu0 %2331  ;;  %3411 = vmatprep.mubr.msk.f32.mxu0 %vm66_vm1, %v4093_v40  ;;  %v2438_v63 = vpop.permute.xlu1 %2437 }
 0xed2   :  { %3415 = vmatpush3.msra.mxu0 %v4036_v20  ;;  %3427 = vmatprep.mubr.msk.f32.mxu1 %vm66_vm1, %v1790_v46 }
 0xed4   :  { %3412 = vmatmul.mubr.msk.f32.gmra.mxu0 %vm66_vm1, %v4080_v38 }
 0xed5   :  { %3428 = vmatmul.mubr.msk.f32.gmra.mxu1 %vm66_vm1, %v1792_v50  ;;  %v2434_v1 = vpop.permute.xlu0 %2433  ;;  %v2010_v2 = vpop.permute.xlu1 %2009  ;;  %3416 = vmatprep.mubr.msk.f32.mxu0 %vm66_vm1, %v3966_v36 }
 0xed6   :  { %3440 = vmatprep.mubr.msk.f32.mxu1 %vm66_vm1, %v2002_v55  ;;  %3438 = vmatprep.subr.mxu1 %v2010_v2 }
 0xed7   :  { %3439 = vmatpush3.msra.mxu1 %v2010_v2 }
 0xed8   :  { %3417 = vmatmul.mubr.msk.f32.vlgmr.msra.gmra.mxu0 %vm66_vm1, %v3956_v33 }
 0xed9   :  { %3441 = vmatmul.mubr.msk.f32.vlgmr.msra.gmra.mxu1 %vm66_vm1, %v2004_v49  ;;  %v2544_v3 = vpop.permute.xlu0 %2543  ;;  %v2546_v41 = vpop.permute.xlu1 %2545  ;;  %3419 = vmatprep.mubr.msk.f32.mxu0 %vm66_vm1, %v4001_v5 }
 0xeda   :  { %3443 = vmatprep.mubr.msk.f32.mxu1 %vm66_vm1, %v2006_v54 }
 0xedc   :  { %3420 = vmatmul.mubr.msk.f32.gmra.mxu0 %vm66_vm1, %v3960_v34 }
 0xedd   :  { %3444 = vmatmul.mubr.msk.f32.gmra.mxu1 %vm66_vm1, %v2008_v59  ;;  %v1902_v36 = vpop.permute.xlu0 %1901  ;;  %3432 = vmatprep.mubr.msk.f32.mxu0 %vm66_vm1, %v4112_v45  ;;  %v2226_v6 = vpop.permute.xlu1 %2225 }
 0xede   :  { %3456 = vmatprep.mubr.msk.f32.mxu1 %vm66_vm1, %v2218_v24  ;;  %3430 = vmatprep.subr.mxu0 %v1902_v36 }
 0xedf   :  { %3454 = vmatprep.subr.mxu1 %v2226_v6  ;;  %3431 = vmatpush3.msra.mxu0 %v1902_v36 }
 0xee0   :  { %3455 = vmatpush3.msra.mxu1 %v2226_v6  ;;  %3433 = vmatmul.mubr.msk.f32.vlgmr.msra.gmra.mxu0 %vm66_vm1, %v4127_v48 }
 0xee1   :  { %3457 = vmatmul.mubr.msk.f32.vlgmr.msra.gmra.mxu1 %vm66_vm1, %v2220_v58  ;;  %v2440_v33 = vpop.permute.xlu0 %2439  ;;  %3435 = vmatprep.mubr.msk.f32.mxu0 %vm66_vm1, %v4121_v47  ;;  %v2652_v34 = vpop.permute.xlu1 %2651 }
 0xee2   :  { %3459 = vmatprep.mubr.msk.f32.mxu1 %vm66_vm1, %v2222_v23 }
 0xee4   :  { %3436 = vmatmul.mubr.msk.f32.gmra.mxu0 %vm66_vm1, %v4139_v53 }
 0xee5   :  { %3460 = vmatmul.mubr.msk.f32.gmra.mxu1 %vm66_vm1, %v2224_v35  ;;  %v2118_v5 = vpop.permute.xlu0 %2117  ;;  %3448 = vmatprep.mubr.msk.f32.mxu0 %vm66_vm1, %v4135_v51  ;;  %v2442_v7 = vpop.permute.xlu1 %2441 }
 0xee6   :  { %3472 = vmatprep.mubr.msk.f32.mxu1 %vm66_vm1, %v2434_v1  ;;  %3446 = vmatprep.subr.mxu0 %v2118_v5 }
 0xee7   :  { %3470 = vmatprep.subr.mxu1 %v2442_v7  ;;  %3447 = vmatpush3.msra.mxu0 %v2118_v5 }
 0xee8   :  { %3471 = vmatpush3.msra.mxu1 %v2442_v7  ;;  %3449 = vmatmul.mubr.msk.f32.vlgmr.msra.gmra.mxu0 %vm66_vm1, %v4149_v57 }
 0xee9   :  { %3473 = vmatmul.mubr.msk.f32.vlgmr.msra.gmra.mxu1 %vm66_vm1, %v2436_v30  ;;  %v2548_v8 = vpop.permute.xlu0 %2547  ;;  %3451 = vmatprep.mubr.msk.f32.mxu0 %vm66_vm1, %v4146_v56  ;;  %v2758_v9 = vpop.permute.xlu1 %2757 }
 0xeea   :  { %3475 = vmatprep.mubr.msk.f32.mxu1 %vm66_vm1, %v2438_v63 }
 0xeec   :  { %3452 = vmatmul.mubr.msk.f32.gmra.mxu0 %vm66_vm1, %v4155_v22 }
 0xeed   :  { %3476 = vmatmul.mubr.msk.f32.gmra.mxu1 %vm66_vm1, %v2440_v33  ;;  %v2334_v10 = vpop.permute.xlu0 %2333  ;;  %3464 = vmatprep.mubr.msk.f32.mxu0 %vm66_vm1, %v4153_v21  ;;  %v2658_v11 = vpop.permute.xlu1 %2657 }
 0xeee   :  { %3462 = vmatprep.subr.mxu0 %v2334_v10  ;;  %3486 = vmatprep.subr.mxu1 %v2658_v11 }
 0xeef   :  { %3463 = vmatpush3.msra.mxu0 %v2334_v10  ;;  %3487 = vmatpush3.msra.mxu1 %v2658_v11 }
 0xef0   :  { %3465 = vmatmul.mubr.msk.f32.vlgmr.msra.gmra.mxu0 %vm66_vm1, %v4159_v27 }
 0xef1   :  { %v2650_v12 = vpop.permute.xlu0 %2649  ;;  %3467 = vmatprep.mubr.msk.f32.mxu0 %vm66_vm1, %v4157_v25  ;;  %v2654_v14 = vpop.permute.xlu1 %2653 }
 0xef2   :  { %3488 = vmatprep.mubr.msk.f32.mxu1 %vm66_vm1, %v2650_v12 }
 0xef3   :  { %3489 = vmatmul.mubr.msk.f32.vlgmr.msra.gmra.mxu1 %vm66_vm1, %v2652_v34 }
 0xef4   :  { %3468 = vmatmul.mubr.msk.f32.gmra.mxu0 %vm66_vm1, %v4168_v62  ;;  %3491 = vmatprep.mubr.msk.f32.mxu1 %vm66_vm1, %v2654_v14 }
 0xef5   :  { %v2550_v15 = vpop.permute.xlu0 %2549  ;;  %3480 = vmatprep.mubr.msk.f32.mxu0 %vm66_vm1, %v4161_v43  ;;  %v2762_v18 = vpop.permute.xlu1 %2761 }
 0xef6   :  { %3478 = vmatprep.subr.mxu0 %v2550_v15 }
 0xef7   :  { %3479 = vmatpush3.msra.mxu0 %v2550_v15 }
 0xef8   :  { %3481 = vmatmul.mubr.msk.f32.vlgmr.msra.gmra.mxu0 %vm66_vm1, %v2544_v3 }
 0xef9   :  { %v2760_v16 = vpop.permute.xlu0 %2759  ;;  %3483 = vmatprep.mubr.msk.f32.mxu0 %vm66_vm1, %v2546_v41  ;;  %v1544_v26 = vpop.permute.xlu1 %1543 }
 0xefa   :  { %v1564_v54 = vsel %vm228_vm3, %v3618_v13, %v1544_v26 }
 0xefc   :  { %3484 = vmatmul.mubr.msk.f32.gmra.mxu0 %vm66_vm1, %v2548_v8 }
 0xefd   :  { %v2766_v17 = vpop.permute.xlu0 %2765  ;;  %3496 = vmatprep.mubr.msk.f32.mxu0 %vm66_vm1, %v2758_v9  ;;  %v1511_v29 = vpop.permute.xlu1 %1510 }
 0xefe   :  { %3494 = vmatprep.subr.mxu0 %v2766_v17  ;;  %v1531_v58 = vsel %vm228_vm3, %v3609_v4, %v1511_v29  ;;  %vm2868_vm3 = vcmask 62464  }
 0xeff   :  { %3495 = vmatpush3.msra.mxu0 %v2766_v17 }
 0xf00   :  { %3497 = vmatmul.mubr.msk.f32.vlgmr.msra.gmra.mxu0 %vm66_vm1, %v2760_v16 }
 0xf01   :  { %v2656_v19 = vpop.permute.xlu0 %2655  ;;  %3499 = vmatprep.mubr.msk.f32.mxu0 %vm66_vm1, %v2762_v18  ;;  %v1514_v39 = vpop.permute.xlu1 %1513 }
 0xf02   :  { %3492 = vmatmul.mubr.msk.f32.gmra.mxu1 %vm66_vm1, %v2656_v19  ;;  %v1532_v22 = vsel %vm66_vm1, %v1531_v58, %v1514_v39 }
 0xf05   :  { %v2764_v20 = vpop.permute.xlu0 %2763  ;;  %v1517_v47 = vpop.permute.xlu1 %1516 }
 0xf06   :  { %3500 = vmatmul.mubr.msk.f32.gmra.mxu0 %vm66_vm1, %v2764_v20  ;;  %v1534_v13 = vsel %vm1533_vm13, %v1532_v22, %v1517_v47 }
 0xf09   :  { %v1547_v28 = vpop.permute.xlu0 %1546  ;;  %v1520_v49 = vpop.permute.xlu1 %1519 }
 0xf0a   :  { %v1565_v55 = vsel %vm66_vm1, %v1564_v54, %v1547_v28  ;;  %v1535_v60 = vsel %vm1259_vm8, %v1534_v13, %v1520_v49 }
 0xf0d   :  { %v1550_v31 = vpop.permute.xlu0 %1549  ;;  %v1572_v51 = vpop.permute.xlu1 %1571 }
 0xf0e   :  { %v1566_v59 = vsel %vm1533_vm13, %v1565_v55, %v1550_v31 }
 0xf11   :  { %v1553_v42 = vpop.permute.xlu0 %1552  ;;  %v1562_v24 = vpop.permute.xlu1 %1561 }
 0xf12   :  { %v1567_v23 = vsel %vm1259_vm8, %v1566_v59, %v1553_v42 }
 0xf15   :  { %v1556_v48 = vpop.permute.xlu0 %1555  ;;  %v1529_v6 = vpop.permute.xlu1 %1528 }
 0xf16   :  { %v1568_v30 = vsel %vm1536_vm14, %v1567_v23, %v1556_v48 }
 0xf19   :  { %v1559_v50 = vpop.permute.xlu0 %1558 }
 0xf1a   :  { %v1569_v4 = vsel %vm1538_vm15, %v1568_v30, %v1559_v50 }
 0xf1b   :  { %v1570_v41 = vsel %vm1540_vm0, %v1569_v4, %v1562_v24 }
 0xf1d   :  { %v1377_v32 = vpop.f32.mrf.mxu1  ;;  %v1523_v52 = vpop.permute.xlu0 %1522 }
 0xf1e   :  { %v1537_v63 = vsel %vm1536_vm14, %v1535_v60, %v1523_v52 }
 0xf1f   :  { %v3372_v37 = vpop.f32.mrf.mxu1 }
 0xf20   :  { %v1334_v38 = vpop.f32.mrf.mxu0 }
 0xf21   :  { %v1380_v40 = vpop.f32.mrf.mxu1  ;;  %v1378_v56 = vadd.f32 %v1377_v32, %v1334_v38  ;;  %v1526_v35 = vpop.permute.xlu0 %1525 }
 0xf22   :  { %v3356_v44 = vpop.f32.mrf.mxu0  ;;  %v1539_v2 = vsel %vm1538_vm15, %v1537_v63, %v1526_v35 }
 0xf23   :  { %v3373_v0 = vpop.f32.mrf.mxu1  ;;  %v1541_v34 = vsel %vm1540_vm0, %v1539_v2, %v1529_v6 }
 0xf24   :  { %v1337_v45 = vpop.f32.mrf.mxu0 }
 0xf26   :  { %v3357_v46 = vpop.f32.mrf.mxu0 }
 0xf35   :  { %v1502_v53 = vpop.f32.mrf.mxu1 }
 0xf37   :  { %v3404_v57 = vpop.f32.mrf.mxu1 }
 0xf38   :  { %v1439_v21 = vpop.f32.mrf.mxu0 }
 0xf39   :  { %v1445_v25 = vadd.f32 %v1439_v21, %v1378_v56  ;;  %v1505_v27 = vpop.f32.mrf.mxu1 }
 0xf3a   :  { %v3388_v43 = vpop.f32.mrf.mxu0 }
 0xf3b   :  { %v1508_v61 = vadd.f32 %v1502_v53, %v1445_v25  ;;  %v3405_v62 = vpop.f32.mrf.mxu1 }
 0xf3c   :  { %v1442_v1 = vpop.f32.mrf.mxu0 }
 0xf3d   :  { %v1574_v3 = vadd.f32 %v1572_v51, %v1508_v61 }
 0xf3e   :  { %v3389_v36 = vpop.f32.mrf.mxu0 }
 0xf3f   :  { %v1575_v33 = vmul.f32 %v1574_v3, %v1570_v41 }
 0xf41   :  { %v1576_v5 = vadd.f32 %v1575_v33, %v1541_v34 }
 0xf43   :  { %1578 = vrot.lane.b32.xlu0 %v1576_v5, %s3559_s18 }
 0xf90   :  { %v3410_v7 = vpop.f32.mrf.mxu0 }
 0xf91   :  { %v3426_v8 = vpop.f32.mrf.mxu1 }
 0xf92   :  { %v1673_v9 = vpop.f32.mrf.mxu0 }
 0xf93   :  { %v1870_v10 = vpop.f32.mrf.mxu1 }
 0xf94   :  { %v3413_v11 = vpop.f32.mrf.mxu0 }
 0xf95   :  { %v3429_v12 = vpop.f32.mrf.mxu1 }
 0xf96   :  { %v1683_v14 = vpop.f32.mrf.mxu0 }
 0xf97   :  { %v1880_v15 = vpop.f32.mrf.mxu1 }
 0xf98   :  { %v3418_v16 = vpop.f32.mrf.mxu0 }
 0xf99   :  { %v3442_v17 = vpop.f32.mrf.mxu1  ;;  %v1772_v38 = vadd.f32 %v3418_v16, %v3410_v7 }
 0xf9a   :  { %v1766_v18 = vpop.f32.mrf.mxu0 }
 0xf9b   :  { %v2086_v19 = vpop.f32.mrf.mxu1  ;;  %v1767_v42 = vadd.f32 %v1766_v18, %v1673_v9  ;;  %v1890_v45 = vadd.f32 %v3426_v8, %v1772_v38 }
 0xf9c   :  { %v3421_v20 = vpop.f32.mrf.mxu0 }
 0xf9d   :  { %v3445_v26 = vpop.f32.mrf.mxu1  ;;  %v1889_v48 = vadd.f32 %v1870_v10, %v1767_v42  ;;  %v1782_v51 = vadd.f32 %v3421_v20, %v3413_v11 }
 0xf9e   :  { %v1776_v28 = vpop.f32.mrf.mxu0 }
 0xf9f   :  { %v2096_v29 = vpop.f32.mrf.mxu1  ;;  %v1777_v54 = vadd.f32 %v1776_v28, %v1683_v14  ;;  %v1892_v58 = vadd.f32 %v3429_v12, %v1782_v51 }
 0xfa0   :  { %v3434_v31 = vpop.f32.mrf.mxu0 }
 0xfa1   :  { %v3458_v32 = vpop.f32.mrf.mxu1  ;;  %v1998_v47 = vadd.f32 %v3434_v31, %v1890_v45  ;;  %v1891_v24 = vadd.f32 %v1880_v15, %v1777_v54 }
 0xfa2   :  { %v1978_v37 = vpop.f32.mrf.mxu0 }
 0xfa3   :  { %v2302_v39 = vpop.f32.mrf.mxu1  ;;  %v1997_v52 = vadd.f32 %v1978_v37, %v1889_v48  ;;  %v2106_v55 = vadd.f32 %v3442_v17, %v1998_v47 }
 0xfa4   :  { %v3437_v40 = vpop.f32.mrf.mxu0 }
 0xfa5   :  { %v3461_v44 = vpop.f32.mrf.mxu1  ;;  %v2105_v21 = vadd.f32 %v2086_v19, %v1997_v52  ;;  %v2000_v23 = vadd.f32 %v3437_v40, %v1892_v58 }
 0xfa6   :  { %v1988_v0 = vpop.f32.mrf.mxu0 }
 0xfa7   :  { %v2312_v49 = vpop.f32.mrf.mxu1  ;;  %v1999_v30 = vadd.f32 %v1988_v0, %v1891_v24  ;;  %v2108_v60 = vadd.f32 %v3445_v26, %v2000_v23 }
 0xfa8   :  { %v3450_v46 = vpop.f32.mrf.mxu0 }
 0xfa9   :  { %v3474_v56 = vpop.f32.mrf.mxu1  ;;  %v2214_v59 = vadd.f32 %v3450_v46, %v2106_v55  ;;  %v2107_v3 = vadd.f32 %v2096_v29, %v1999_v30 }
 0xfaa   :  { %v2194_v50 = vpop.f32.mrf.mxu0 }
 0xfab   :  { %v2213_v25 = vadd.f32 %v2194_v50, %v2105_v21  ;;  %v2518_v27 = vpop.f32.mrf.mxu1  ;;  %v2322_v35 = vadd.f32 %v3458_v32, %v2214_v59 }
 0xfac   :  { %v3453_v53 = vpop.f32.mrf.mxu0 }
 0xfad   :  { %v2321_v61 = vadd.f32 %v2302_v39, %v2213_v25  ;;  %v3477_v63 = vpop.f32.mrf.mxu1  ;;  %v2216_v2 = vadd.f32 %v3453_v53, %v2108_v60 }
 0xfae   :  { %v2204_v57 = vpop.f32.mrf.mxu0 }
 0xfaf   :  { %v2215_v6 = vadd.f32 %v2204_v57, %v2107_v3  ;;  %v2528_v34 = vpop.f32.mrf.mxu1  ;;  %v2324_v7 = vadd.f32 %v3461_v44, %v2216_v2 }
 0xfb0   :  { %v3466_v22 = vpop.f32.mrf.mxu0 }
 0xfb1   :  { %v2430_v4 = vadd.f32 %v3466_v22, %v2322_v35  ;;  %v2323_v14 = vadd.f32 %v2312_v49, %v2215_v6 }
 0xfb2   :  { %v2410_v13 = vpop.f32.mrf.mxu0 }
 0xfb3   :  { %v2429_v41 = vadd.f32 %v2410_v13, %v2321_v61  ;;  %v2538_v33 = vadd.f32 %v3474_v56, %v2430_v4  ;;  %v3490_v10 = vpop.f32.mrf.mxu1 }
 0xfb4   :  { %v3469_v43 = vpop.f32.mrf.mxu0 }
 0xfb5   :  { %v1579_v62 = vpop.permute.xlu0 %1578  ;;  %v2537_v9 = vadd.f32 %v2518_v27, %v2429_v41  ;;  %v2432_v12 = vadd.f32 %v3469_v43, %v2324_v7  ;;  %v2734_v19 = vpop.f32.mrf.mxu1 }
 0xfb6   :  { %1582 = vst.msk [vmem:[%s4267_s2] sm:$0x3] %vm1581_vm2, %v1579_v62  ;;  %v2420_v1 = vpop.f32.mrf.mxu0 }
 0xfb7   :  { %v2431_v17 = vadd.f32 %v2420_v1, %v2323_v14  ;;  %v2540_v26 = vadd.f32 %v3477_v63, %v2432_v12 }
 0xfb8   :  { %v3482_v36 = vpop.f32.mrf.mxu0 }
 0xfb9   :  { %v2646_v8 = vadd.f32 %v3482_v36, %v2538_v33  ;;  %v2539_v38 = vadd.f32 %v2528_v34, %v2431_v17 }
 0xfba   :  { %v2626_v5 = vpop.f32.mrf.mxu0 }
 0xfbb   :  { %v2645_v15 = vadd.f32 %v2626_v5, %v2537_v9  ;;  %v2754_v18 = vadd.f32 %v3490_v10, %v2646_v8 }
 0xfbc   :  { %v3485_v11 = vpop.f32.mrf.mxu0 }
 0xfbd   :  { %v2753_v29 = vadd.f32 %v2734_v19, %v2645_v15  ;;  %v2648_v37 = vadd.f32 %v3485_v11, %v2540_v26 }
 0xfbe   :  { %v2636_v16 = vpop.f32.mrf.mxu0 }
 0xfbf   :  { %v2647_v42 = vadd.f32 %v2636_v16, %v2539_v38 }
 0xfc0   :  { %v3498_v20 = vpop.f32.mrf.mxu0 }
 0xfc1   :  { %v2862_v28 = vadd.f32 %v3498_v20, %v2754_v18 }
 0xfc2   :  { %v3493_v31 = vpop.f32.mrf.mxu1  ;;  %v2842_v32 = vpop.f32.mrf.mxu0 }
 0xfc3   :  { %2866 = vst.msk [vmem:[%s4267_s2 + $0x10] sm:$0xff] %vm66_vm1, %v2862_v28  ;;  %v2861_v39 = vadd.f32 %v2842_v32, %v2753_v29  ;;  %v2756_v44 = vadd.f32 %v3493_v31, %v2648_v37 }
 0xfc4   :  { %v2744_v40 = vpop.f32.mrf.mxu1 }
 0xfc5   :  { %2865 = vst.msk [vmem:[%s4267_s2 + $0x8] sm:$0xff] %vm66_vm1, %v2861_v39  ;;  %v2755_v45 = vadd.f32 %v2744_v40, %v2647_v42 }
 0xfc6   :  { %v3501_v0 = vpop.f32.mrf.mxu0 }
 0xfc7   :  { %v2864_v46 = vadd.f32 %v3501_v0, %v2756_v44 }
 0xfc8   :  { %v2852_v47 = vpop.f32.mrf.mxu0 }
 0xfc9   :  { %2869 = vst.msk [vmem:[%s4267_s2 + $0x20] sm:$0x3f] %vm2868_vm3, %v2864_v46  ;;  %v2863_v48 = vadd.f32 %v2852_v47, %v2755_v45 }
 0xfcb   :  { %2867 = vst.msk [vmem:[%s4267_s2 + $0x18] sm:$0xff] %vm66_vm1, %v2863_v48 }
 0xfcc   :  { %2874 = vsyncpa [#allocation3], 1 }

</bundles_post_ra>
